<compile_context>
chip_gen: v6e
topology: v6e:2x2x1
jax: 0.10.0
libtpu: 0.0.40
codegen_flags: <defaults>
</compile_context>

<pallas_src>
import functools
import math

import jax
import jax.numpy as jnp
import numpy as np
from jax import lax
from jax.experimental import pallas as pl
from jax.experimental.pallas import tpu as pltpu


def _cgn_kernel(x_ref, b_ref, pool_ref, poolt_ref, pooltw_ref, o_ref, *,
                group_size, eps, precision):
    x = x_ref[...].astype(jnp.float32)        # (TM, Cp)
    b = b_ref[...]                            # (1, Cp)  f32 (pre-cast)
    pool = pool_ref[...]                      # (Cp, Gp) f32 {0,1} block-diag
    pool_t = poolt_ref[...]                   # (Gp, Cp) f32 {0,1}
    pool_t_w = pooltw_ref[...]                # (Gp, Cp) = pool_t * weight

    # Group sums via block-diagonal pooling matmul on the otherwise-idle MXU.
    gsum = jnp.dot(x, pool, precision=precision,
                   preferred_element_type=jnp.float32)             # (TM, Gp)
    mean_g = gsum * (1.0 / group_size)
    mean = jnp.dot(mean_g, pool_t, precision=precision,
                   preferred_element_type=jnp.float32)             # (TM, Cp)
    diff = x - mean
    ssq_g = jnp.dot(diff * diff, pool, precision=precision,
                    preferred_element_type=jnp.float32)            # (TM, Gp)
    # torch.var default is unbiased: divide by (gs - 1).
    var_g = ssq_g * (1.0 / (group_size - 1))
    inv_g = lax.rsqrt(var_g + eps)                                  # EUP slot
    # Broadcast inv_g back to channels with the weight already folded in.
    inv_w = jnp.dot(inv_g, pool_t_w, precision=precision,
                    preferred_element_type=jnp.float32)             # (TM, Cp)
    o_ref[...] = (diff * inv_w + b).astype(o_ref.dtype)


def _round_up(a, b):
    return -(-a // b) * b


def _choose_pack(C, N, cap_lanes=512):
    """Lane-packing factor: (pack*C) % 128 == 0, pack | N, Cp <= cap_lanes.

    Preference: Cp == 256 (v6e/v7x MXU width) > 128 > larger.  Returning 1
    (no packing) is always legal because C then equals the full last dim.
    """
    if C % 128 == 0:
        return 1
    if C > cap_lanes:
        return 1
    base = 128 // math.gcd(C, 128)            # smallest k with (k*C) % 128 == 0
    cands = list(range(base, cap_lanes // C + 1, base))
    pref = {256: 0, 128: 1}
    cands.sort(key=lambda k: (pref.get(k * C, 2), k * C))
    for k in cands:
        if N % k == 0:                        # avoids any row padding / copies
            return k
    return 1


def complex_group_norm(x, weight, bias, num_groups, eps=1e-5, *,
                       row_tile=2048, precision=lax.Precision.HIGHEST):
    """GroupNorm over the last axis. x: any shape with size % C == 0.

    Returns a (-1, C) array, exactly like the torch module's forward.
    """
    C = weight.shape[0]
    assert x.size % C == 0
    x2 = x.reshape(-1, C)
    N = x2.shape[0]
    assert C % num_groups == 0
    gs = C // num_groups
    # Unbiased variance (torch.var default) divides by gs - 1.
    assert gs > 1, "group_size must be > 1 for unbiased variance"

    # Lane-dense packing: fold `pack` consecutive rows into the lane axis.
    pack = _choose_pack(C, N)
    Cp = pack * C
    Gp = pack * num_groups
    m = N // pack
    xp = x2.reshape(m, Cp)                    # row-major relabel: no HBM copy

    # Row tile: multiple of 8 sublanes; >= 2 grid steps whenever m > 8 so the
    # v7x megacore splits rows; ragged last block handled by the cdiv grid.
    row_tile = max(8, _round_up(int(row_tile), 8))
    if m <= 8:
        tm = m                                # full-dim block, single step
    else:
        tm = min(row_tile, _round_up(pl.cdiv(m, 2), 8))
    grid_m = pl.cdiv(m, tm)

    # Resident f32 parameters / pooling matrices (hoisted out of the kernel).
    w2 = jnp.tile(weight.astype(jnp.float32), pack).reshape(1, Cp)
    b2 = jnp.tile(bias.astype(jnp.float32), pack).reshape(1, Cp)
    grp = np.arange(Cp) // gs
    pool_np = (grp[:, None] == np.arange(Gp)[None, :]).astype(np.float32)
    pool = jnp.asarray(pool_np)                               # (Cp, Gp)
    pool_t = jnp.asarray(np.ascontiguousarray(pool_np.T))     # (Gp, Cp)
    pool_t_w = pool_t * w2                                    # weight folded in

    kernel = functools.partial(_cgn_kernel, group_size=gs, eps=eps,
                               precision=precision)

    itemsize = jnp.dtype(x2.dtype).itemsize
    cost = pl.CostEstimate(
        # 4 pool matmuls (2 contractions + 2 broadcasts) + elementwise.
        flops=int(8 * Cp * Gp * m + 6 * N * C),
        transcendentals=int(N * num_groups),
        bytes_accessed=int(2 * N * C * itemsize + 4 * (Cp + 3 * Cp * Gp)),
    )

    out = pl.pallas_call(
        kernel,
        out_shape=jax.ShapeDtypeStruct((m, Cp), x2.dtype),
        grid_spec=pltpu.PrefetchScalarGridSpec(
            num_scalar_prefetch=0,
            grid=(grid_m,),
            in_specs=[
                pl.BlockSpec((tm, Cp), lambda i: (i, 0)),
                pl.BlockSpec((1, Cp), lambda i: (0, 0)),
                pl.BlockSpec((Cp, Gp), lambda i: (0, 0)),
                pl.BlockSpec((Gp, Cp), lambda i: (0, 0)),
                pl.BlockSpec((Gp, Cp), lambda i: (0, 0)),
            ],
            out_specs=pl.BlockSpec((tm, Cp), lambda i: (i, 0)),
        ),
        compiler_params=pltpu.CompilerParams(
            dimension_semantics=("parallel",),      # shards rows across TCs
            vmem_limit_bytes=48 * 1024 * 1024),     # < physical on v5e/v6e/v7x
        cost_estimate=cost,
    )(xp, b2, pool, pool_t, pool_t_w)

    # Undo lane packing (free reshape); no padding / slicing needed.
    return out.reshape(N, C)


def _reference(x, weight, bias, num_groups, eps=1e-5):
    """Pure-JAX mirror of the torch module (unbiased variance)."""
    C = weight.shape[0]
    gs = C // num_groups
    xr = x.reshape(-1, num_groups, gs).astype(jnp.float32)
    mean = xr.mean(axis=2, keepdims=True)
    var = ((xr - mean) ** 2).sum(axis=2, keepdims=True) / (gs - 1)
    xr = (xr - mean) / jnp.sqrt(var + eps)
    y = xr.reshape(-1, C)
    return (y * weight[None, :] + bias[None, :]).astype(x.dtype)


if __name__ == "__main__":
    key = jax.random.PRNGKey(0)

    # (x_shape, num_groups, row_tile) — small shapes exercising: lane packing
    # to Cp=256, the pack=1 fallback (no padding ever), ragged last blocks,
    # and multi-step grids.
    cases = [
        ((2, 8, 32), 4, 2048),     # C=32, N=16  -> pack=8, Cp=256, 1 step
        ((21, 8, 32), 4, 2048),    # N=168       -> pack=8, m=21, ragged grid
        ((3, 7, 32), 8, 2048),     # N=21        -> pack=1 fallback, ragged
        ((2, 20, 128), 32, 16),    # C=128 (pack=1), 3-step grid, ragged tail
        ((4, 8, 64), 16, 2048),    # C=64, N=32  -> pack=4, Cp=256
    ]

    for idx, (shape, num_groups, rt) in enumerate(cases):
        C = shape[-1]
        kx, kw, kb = jax.random.split(jax.random.fold_in(key, idx), 3)
        x = jax.random.normal(kx, shape, dtype=jnp.float32)
        # Module init is ones/zeros; perturb slightly so affine is exercised.
        weight = jnp.ones((C,), jnp.float32) + 0.01 * jax.random.normal(
            kw, (C,), jnp.float32)
        bias = 0.01 * jax.random.normal(kb, (C,), jnp.float32)

        out = complex_group_norm(x, weight, bias, num_groups, row_tile=rt)
        out = jax.block_until_ready(out)

        ref = _reference(x, weight, bias, num_groups)
        np.testing.assert_allclose(np.asarray(out), np.asarray(ref),
                                   rtol=1e-5, atol=1e-5)

    print("KERNEL_OK")
</pallas_src>

<mosaic_0001>
module attributes {stable_mosaic.version = 11 : i64} {
  func.func @_cgn_kernel(%arg0: i32, %arg1: memref<2x256xf32, #tpu.memory_space<vmem>>, %arg2: memref<1x256xf32, #tpu.memory_space<vmem>>, %arg3: memref<256x32xf32, #tpu.memory_space<vmem>>, %arg4: memref<32x256xf32, #tpu.memory_space<vmem>>, %arg5: memref<32x256xf32, #tpu.memory_space<vmem>>, %arg6: memref<2x256xf32, #tpu.memory_space<vmem>>) attributes {dimension_semantics = [#tpu.dimension_semantics<parallel>], iteration_bounds = array<i64: 1>, scalar_prefetch = 0 : i64, scratch_operands = 0 : i64, tpu.core_type = #tpu.core_type<tc>, window_params = [{transform_indices = @transform_0, window_bounds = array<i64: 2, 256>}, {pipeline_mode = #tpu.pipeline_mode<synchronous>, transform_indices = @transform_1, window_bounds = array<i64: 1, 256>}, {pipeline_mode = #tpu.pipeline_mode<synchronous>, transform_indices = @transform_2, window_bounds = array<i64: 256, 32>}, {pipeline_mode = #tpu.pipeline_mode<synchronous>, transform_indices = @transform_3, window_bounds = array<i64: 32, 256>}, {pipeline_mode = #tpu.pipeline_mode<synchronous>, transform_indices = @transform_4, window_bounds = array<i64: 32, 256>}, {transform_indices = @transform_5, window_bounds = array<i64: 2, 256>}]} {
    %c0 = arith.constant 0 : index
    %c0_0 = arith.constant 0 : index
    %0 = vector.load %arg1[%c0, %c0_0] : memref<2x256xf32, #tpu.memory_space<vmem>>, vector<2x256xf32>
    %c0_1 = arith.constant 0 : index
    %c0_2 = arith.constant 0 : index
    %1 = vector.load %arg2[%c0_1, %c0_2] : memref<1x256xf32, #tpu.memory_space<vmem>>, vector<1x256xf32>
    %c0_3 = arith.constant 0 : index
    %c0_4 = arith.constant 0 : index
    %2 = vector.load %arg3[%c0_3, %c0_4] : memref<256x32xf32, #tpu.memory_space<vmem>>, vector<256x32xf32>
    %c0_5 = arith.constant 0 : index
    %c0_6 = arith.constant 0 : index
    %3 = vector.load %arg4[%c0_5, %c0_6] : memref<32x256xf32, #tpu.memory_space<vmem>>, vector<32x256xf32>
    %c0_7 = arith.constant 0 : index
    %c0_8 = arith.constant 0 : index
    %4 = vector.load %arg5[%c0_7, %c0_8] : memref<32x256xf32, #tpu.memory_space<vmem>>, vector<32x256xf32>
    %cst = arith.constant dense<0.000000e+00> : vector<2x32xf32>
    %5 = tpu.matmul %0, %2, %cst {dimension_numbers = #tpu.dot_dimension_numbers<[1], [0], [0], [1], [0, 0, 1, 1], [], []>, precision = #tpu.contract_precision<fp32>} : vector<2x256xf32>, vector<256x32xf32>, vector<2x32xf32> -> vector<2x32xf32>
    %cst_9 = arith.constant 1.250000e-01 : f32
    %6 = vector.broadcast %cst_9 : f32 to vector<2x32xf32>
    %7 = arith.mulf %5, %6 : vector<2x32xf32>
    %cst_10 = arith.constant dense<0.000000e+00> : vector<2x256xf32>
    %8 = tpu.matmul %7, %3, %cst_10 {dimension_numbers = #tpu.dot_dimension_numbers<[1], [0], [0], [1], [0, 0, 1, 1], [], []>, precision = #tpu.contract_precision<fp32>} : vector<2x32xf32>, vector<32x256xf32>, vector<2x256xf32> -> vector<2x256xf32>
    %9 = arith.subf %0, %8 : vector<2x256xf32>
    %10 = arith.mulf %9, %9 : vector<2x256xf32>
    %cst_11 = arith.constant dense<0.000000e+00> : vector<2x32xf32>
    %11 = tpu.matmul %10, %2, %cst_11 {dimension_numbers = #tpu.dot_dimension_numbers<[1], [0], [0], [1], [0, 0, 1, 1], [], []>, precision = #tpu.contract_precision<fp32>} : vector<2x256xf32>, vector<256x32xf32>, vector<2x32xf32> -> vector<2x32xf32>
    %cst_12 = arith.constant 0.142857149 : f32
    %12 = vector.broadcast %cst_12 : f32 to vector<2x32xf32>
    %13 = arith.mulf %11, %12 : vector<2x32xf32>
    %cst_13 = arith.constant 9.99999974E-6 : f32
    %14 = vector.broadcast %cst_13 : f32 to vector<2x32xf32>
    %15 = arith.addf %13, %14 : vector<2x32xf32>
    %16 = math.rsqrt %15 : vector<2x32xf32>
    %cst_14 = arith.constant dense<0.000000e+00> : vector<2x256xf32>
    %17 = tpu.matmul %16, %4, %cst_14 {dimension_numbers = #tpu.dot_dimension_numbers<[1], [0], [0], [1], [0, 0, 1, 1], [], []>, precision = #tpu.contract_precision<fp32>} : vector<2x32xf32>, vector<32x256xf32>, vector<2x256xf32> -> vector<2x256xf32>
    %18 = arith.mulf %9, %17 : vector<2x256xf32>
    %19 = vector.broadcast %1 : vector<1x256xf32> to vector<2x256xf32>
    %20 = arith.addf %18, %19 : vector<2x256xf32>
    %c0_15 = arith.constant 0 : index
    %c0_16 = arith.constant 0 : index
    %21 = vector.load %arg6[%c0_15, %c0_16] : memref<2x256xf32, #tpu.memory_space<vmem>>, vector<2x256xf32>
    tpu.vector_store %arg6[%c0_15, %c0_16], %20 {strides = array<i32>} : memref<2x256xf32, #tpu.memory_space<vmem>>, vector<2x256xf32>,
    return
  }
  func.func @transform_0(%arg0: i32) -> (i32, i32) {
    %c0_i32 = arith.constant 0 : i32
    %c0_i32_0 = arith.constant 0 : i32
    return %arg0, %c0_i32 : i32, i32
  }
  func.func @transform_1(%arg0: i32) -> (i32, i32) {
    %c0_i32 = arith.constant 0 : i32
    %c0_i32_0 = arith.constant 0 : i32
    %c0_i32_1 = arith.constant 0 : i32
    return %c0_i32, %c0_i32_0 : i32, i32
  }
  func.func @transform_2(%arg0: i32) -> (i32, i32) {
    %c0_i32 = arith.constant 0 : i32
    %c0_i32_0 = arith.constant 0 : i32
    %c0_i32_1 = arith.constant 0 : i32
    return %c0_i32, %c0_i32_0 : i32, i32
  }
  func.func @transform_3(%arg0: i32) -> (i32, i32) {
    %c0_i32 = arith.constant 0 : i32
    %c0_i32_0 = arith.constant 0 : i32
    %c0_i32_1 = arith.constant 0 : i32
    return %c0_i32, %c0_i32_0 : i32, i32
  }
  func.func @transform_4(%arg0: i32) -> (i32, i32) {
    %c0_i32 = arith.constant 0 : i32
    %c0_i32_0 = arith.constant 0 : i32
    %c0_i32_1 = arith.constant 0 : i32
    return %c0_i32, %c0_i32_0 : i32, i32
  }
  func.func @transform_5(%arg0: i32) -> (i32, i32) {
    %c0_i32 = arith.constant 0 : i32
    %c0_i32_0 = arith.constant 0 : i32
    return %arg0, %c0_i32 : i32, i32
  }
}

</mosaic_0001>

<bundles_post_ra>
// kernel: tpu_custom_call.1
= control target key start
LH: loop header
LB: loop body
LE: loop exit
PB: predicated region body
PF: predicated region fallthrough
CT: control target
= control target key end

     0   :  { %v3420_v16 = vmov 1983009808   ;;  %s4800_s0 = inlined_call_operand.vmem [shape: f32[2,256], index: 0, kind: input, shape index: {}]   ;;  %s4801_s1 = inlined_call_operand.vmem [shape: f32[1,256], index: 1, kind: input, shape index: {}]   ;;  %s4802_s2 = inlined_call_operand.vmem [shape: f32[256,32], index: 2, kind: input, shape index: {}]   ;;  %s4803_s3 = inlined_call_operand.vmem [shape: f32[32,256], index: 3, kind: input, shape index: {}]   ;;  %s4804_s4 = inlined_call_operand.vmem [shape: f32[32,256], index: 4, kind: input, shape index: {}]   ;;  %s4805_s5 = inlined_call_operand.hbm [shape: f32[2,256], index: 5, kind: output, shape index: {}]  }
   0x1   :  { %v54_v0 = vld [vmem:[%s4802_s2 + $0xf8] sm:$0xff]  ;;  %v53_v2 = vld [vmem:[%s4802_s2 + $0xf0] sm:$0xff]  ;;  %v52_v7 = vld [vmem:[%s4802_s2 + $0xe8] sm:$0xff]  ;;  %v3494_v17 = vunpack.c.l.s4 %v3420_v16 }
   0x2   :  { %v38_v1 = vld [vmem:[%s4802_s2 + $0x78] sm:$0xff]  ;;  %v3462_v3 = vand.u32 4294901760, %v54_v0  ;;  %v3466_v5 = vand.u32 4294901760, %v53_v2  ;;  %v37_v6 = vld [vmem:[%s4802_s2 + $0x70] sm:$0xff]  ;;  %v36_v8 = vld [vmem:[%s4802_s2 + $0x68] sm:$0xff]  ;;  %v3479_v11 = vand.u32 4294901760, %v52_v7 }
   0x3   :  { %v3464_v4 = vand.u32 4294901760, %v38_v1  ;;  %v3477_v10 = vand.u32 4294901760, %v37_v6  ;;  %v3481_v12 = vand.u32 4294901760, %v36_v8  ;;  %v51_v13 = vld [vmem:[%s4802_s2 + $0xe0] sm:$0xff]  ;;  %v3492_v15 = vld [vmem:[%s4802_s2 + $0xd8] sm:$0xff]  ;;  %v3515_v23 = vld [vmem:[%s4802_s2 + $0xd0] sm:$0xff] }
   0x4   :  { %v35_v14 = vld [vmem:[%s4802_s2 + $0x60] sm:$0xff]  ;;  %2973 = vmatprep.subr.mxu0 %v3462_v3  ;;  %v3497_v18 = vand.u32 4294901760, %v51_v13  ;;  %v3502_v20 = vand.u32 4294901760, %v3492_v15  ;;  %v3505_v21 = vsub.f32 %v54_v0, %v3462_v3  ;;  %v3510_v22 = vld [vmem:[%s4802_s2 + $0x58] sm:$0xff]  ;;  %v3520_v24 = vld [vmem:[%s4802_s2 + $0x50] sm:$0xff]  ;;  %v3530_v27 = vand.u32 4294901760, %v3515_v23 }
   0x5   :  { %v3499_v19 = vand.u32 4294901760, %v35_v14  ;;  %2974 = vmatpush3.msra.mxu0 %v3464_v4  ;;  %v3524_v25 = vand.u32 4294901760, %v3510_v22  ;;  %v3527_v26 = vsub.f32 %v38_v1, %v3464_v4  ;;  %v3533_v28 = vsub.f32 %v53_v2, %v3466_v5  ;;  %v3538_v29 = vld [vmem:[%s4802_s2 + $0xc8] sm:$0xff]  ;;  %v3548_v31 = vld [vmem:[%s4802_s2 + $0xc0] sm:$0xff]  ;;  %v3607_v49 = vld [vmem:[%s4802_s2 + $0xb8] sm:$0xff] }
   0x6   :  { %4991 = vst [vmem:[#allocation5_spill] sm:$0xff] %v3505_v21  ;;  %v3543_v30 = vld [vmem:[%s4802_s2 + $0x48] sm:$0xff]  ;;  %2975 = vmatprep.subr.mxu0 %v3466_v5  ;;  %v3552_v32 = vand.u32 4294901760, %v3505_v21  ;;  %v3555_v33 = vand.u32 4294901760, %v3520_v24  ;;  %v3558_v34 = vsub.f32 %v37_v6, %v3477_v10  ;;  %v3561_v35 = vand.u32 4294901760, %v3538_v29  ;;  %v3579_v40 = vld [vmem:[%s4802_s2 + $0x40] sm:$0xff] }
   0x7   :  { %4992 = vst [vmem:[#allocation6_spill] sm:$0xff] %v3527_v26  ;;  %4993 = vst [vmem:[#allocation7_spill] sm:$0xff] %v3533_v28  ;;  %2976 = vmatpush3.msra.mxu0 %v3477_v10  ;;  %v3565_v36 = vand.u32 4294901760, %v3527_v26  ;;  %v3568_v37 = vand.u32 4294901760, %v3533_v28  ;;  %v3571_v38 = vsub.f32 %v52_v7, %v3479_v11  ;;  %v3574_v39 = vand.u32 4294901760, %v3543_v30  ;;  %v3623_v54 = vld [vmem:[%s4802_s2 + $0x38] sm:$0xff] }
   0x8   :  { %4994 = vst [vmem:[#allocation8_spill] sm:$0xff] %v3552_v32  ;;  %4995 = vst [vmem:[#allocation9_spill] sm:$0xff] %v3558_v34  ;;  %2977 = vmatprep.subr.mxu0 %v3479_v11  ;;  %v310_v41 = vsub.f32 %v3505_v21, %v3552_v32  ;;  %v3585_v42 = vand.u32 4294901760, %v3558_v34  ;;  %v3588_v43 = vsub.f32 %v36_v8, %v3481_v12  ;;  %v3591_v44 = vand.u32 4294901760, %v3548_v31  ;;  %v3638_v59 = vld [vmem:[%s4802_s2 + $0xb0] sm:$0xff] }
   0x9   :  { %4996 = vst [vmem:[#allocation10_spill] sm:$0xff] %v3565_v36  ;;  %4997 = vst [vmem:[#allocation11_spill] sm:$0xff] %v3568_v37  ;;  %2978 = vmatpush3.msra.mxu0 %v3481_v12  ;;  %v198_v45 = vsub.f32 %v3527_v26, %v3565_v36  ;;  %v317_v46 = vsub.f32 %v3533_v28, %v3568_v37  ;;  %v3599_v47 = vand.u32 4294901760, %v3571_v38  ;;  %v3618_v53 = vand.u32 4294901760, %v3579_v40  ;;  %v3655_v0 = vld [vmem:[%s4802_s2 + $0x30] sm:$0xff] }
   0xa   :  { %4998 = vst [vmem:[#allocation12_spill] sm:$0xff] %v3571_v38  ;;  %4999 = vst [vmem:[#allocation13_spill] sm:$0xff] %v3585_v42  ;;  %v3602_v48 = vsub.f32 %v51_v13, %v3497_v18  ;;  %2979 = vmatprep.subr.mxu0 %v3497_v18  ;;  %v3610_v50 = vand.u32 4294901760, %v310_v41  ;;  %v205_v51 = vsub.f32 %v3558_v34, %v3585_v42  ;;  %v3615_v52 = vand.u32 4294901760, %v3588_v43 }
   0xb   :  { %5000 = vst [vmem:[#allocation14_spill] sm:$0xff] %v3588_v43  ;;  %5001 = vst [vmem:[#allocation15_spill] sm:$0xff] %v3591_v44  ;;  %2980 = vmatpush3.msra.mxu0 %v3499_v19  ;;  %v3626_v55 = vand.u32 4294901760, %v198_v45  ;;  %v3628_v56 = vand.u32 4294901760, %v317_v46  ;;  %v324_v57 = vsub.f32 %v3571_v38, %v3599_v47  ;;  %v3647_v62 = vsub.f32 %v35_v14, %v3499_v19 }
   0xc   :  { %5002 = vst [vmem:[#allocation16_spill] sm:$0xff] %v3599_v47  ;;  %5003 = vst [vmem:[#allocation17_spill] sm:$0xff] %v3602_v48  ;;  %v3633_v58 = vand.u32 4294901760, %v3602_v48  ;;  %2981 = vmatprep.subr.mxu0 %v3502_v20  ;;  %3008 = vmatprep.subr.mxu1 %v3610_v50  ;;  %v3642_v60 = vand.u32 4294901760, %v205_v51  ;;  %v212_v61 = vsub.f32 %v3588_v43, %v3615_v52  ;;  %v3650_v63 = vand.u32 4294901760, %v3607_v49 }
   0xd   :  { %5004 = vst [vmem:[#allocation18_spill] sm:$0xff] %v3610_v50  ;;  %5005 = vst [vmem:[#allocation19_spill] sm:$0xff] %v3615_v52 }
   0xe   :  { %5006 = vst [vmem:[#allocation20_spill] sm:$0xff] %v3618_v53  ;;  %5007 = vst [vmem:[#allocation21_spill] sm:$0xff] %v3626_v55 }
   0xf   :  { %5008 = vst [vmem:[#allocation22_spill] sm:$0xff] %v3628_v56  ;;  %5009 = vst [vmem:[#allocation23_spill] sm:$0xff] %v3633_v58 }
  0x10   :  { %5010 = vst [vmem:[#allocation24_spill] sm:$0xff] %v3642_v60  ;;  %5011 = vst [vmem:[#allocation25_spill] sm:$0xff] %v3647_v62 }
  0x11   :  { %5012 = vst [vmem:[#allocation26_spill] sm:$0xff] %v3650_v63 }
  0x12   :  { %10 = vsyncpa [#allocation3], 0  ;;  %2982 = vmatpush3.msra.mxu0 %v3524_v25  ;;  %3009 = vmatpush3.msra.mxu1 %v3626_v55  ;;  %v3659_v1 = vand.u32 4294901760, %v324_v57  ;;  %v331_v2 = vsub.f32 %v3602_v48, %v3633_v58  ;;  %v3665_v6 = vsub.f32 %v3492_v15, %v3502_v20  ;;  %v3668_v7 = vand.u32 4294901760, %v3623_v54  ;;  %v3673_v8 = vld [vmem:[%s4802_s2 + $0xa8] sm:$0xff]  ;;  %v3725_v9 = vld [vmem:[%s4802_s2 + $0xa0] sm:$0xff] }
  0x13   :  { %2983 = vmatprep.subr.mxu0 %v3530_v27  ;;  %3010 = vmatprep.subr.mxu1 %v3628_v56  ;;  %v3677_v13 = vand.u32 4294901760, %v212_v61  ;;  %v3680_v14 = vand.u32 4294901760, %v3647_v62  ;;  %v3684_v15 = vsub.f32 %v3510_v22, %v3524_v25  ;;  %v3687_v16 = vand.u32 4294901760, %v3638_v59  ;;  %v3692_v41 = vld [vmem:[%s4802_s2 + $0x28] sm:$0xff]  ;;  %v3791_v47 = vld [vmem:[%s4802_s2 + $0x18] sm:$0xff]  ;;  %v3809_v42 = vld [vmem:[%s4802_s2 + $0x90] sm:$0xff] }
  0x14   :  { %5013 = vst [vmem:[#allocation27_spill] sm:$0xff] %v3659_v1  ;;  %5014 = vst [vmem:[#allocation28_spill] sm:$0xff] %v3665_v6  ;;  %2984 = vmatpush3.msra.mxu0 %v3555_v33  ;;  %3011 = vmatpush3.msra.mxu1 %v3642_v60  ;;  %v3696_v45 = vand.u32 4294901760, %v331_v2  ;;  %v3699_v46 = vand.u32 4294901760, %v3665_v6  ;;  %v3703_v22 = vsub.f32 %v3515_v23, %v3530_v27  ;;  %v3706_v51 = vand.u32 4294901760, %v3655_v0  ;;  %v3826_v37 = vld [vmem:[%s4802_s2 + $0x10] sm:$0xff] }
  0x15   :  { %5015 = vst [vmem:[#allocation29_spill] sm:$0xff] %v3668_v7  ;;  %5016 = vst [vmem:[#allocation30_spill] sm:$0xff] %v3677_v13  ;;  %2985 = vmatprep.subr.mxu0 %v3561_v35  ;;  %3012 = vmatprep.subr.mxu1 %v3659_v1  ;;  %v219_v57 = vsub.f32 %v3647_v62, %v3680_v14  ;;  %v3713_v61 = vand.u32 4294901760, %v3684_v15  ;;  %v3717_v2 = vsub.f32 %v3520_v24, %v3555_v33  ;;  %v3845_v32 = vld [vmem:[%s4802_s2 + $0x88] sm:$0xff]  ;;  %vm945_vm0 = vcmask 261120   ;;  %s3422_s12 = smov [#allocation2]  }
  0x16   :  { %5017 = vst [vmem:[#allocation31_spill] sm:$0xff] %v3680_v14  ;;  %5018 = vst [vmem:[#allocation32_spill] sm:$0xff] %v3684_v15  ;;  %v3720_v23 = vand.u32 4294901760, %v3673_v8  ;;  %2986 = vmatpush3.msra.mxu0 %v3574_v39  ;;  %3013 = vmatpush3.msra.mxu1 %v3677_v13  ;;  %v338_v1 = vsub.f32 %v3665_v6, %v3699_v46  ;;  %v3732_v60 = vand.u32 4294901760, %v3703_v22  ;;  %v3739_v56 = vand.u32 4294901760, %v3692_v41 }
  0x17   :  { %5019 = vst [vmem:[#allocation33_spill] sm:$0xff] %v3687_v16  ;;  %5020 = vst [vmem:[#allocation34_spill] sm:$0xff] %v3696_v45  ;;  %v3736_v24 = vsub.f32 %v3538_v29, %v3561_v35  ;;  %2987 = vmatprep.subr.mxu0 %v3591_v44  ;;  %3014 = vmatprep.subr.mxu1 %v3696_v45  ;;  %v3743_v55 = vand.u32 4294901760, %v219_v57  ;;  %v226_v13 = vsub.f32 %v3684_v15, %v3713_v61  ;;  %v3757_v29 = vld [vmem:[%s4802_s2 + $0x20] sm:$0xff] }
  0x18   :  { %5021 = vst [vmem:[#allocation35_spill] sm:$0xff] %v3699_v46  ;;  %5022 = vst [vmem:[#allocation36_spill] sm:$0xff] %v3703_v22  ;;  %v3748_v50 = vand.u32 4294901760, %v3717_v2  ;;  %v3752_v46 = vsub.f32 %v3543_v30, %v3574_v39  ;;  %2988 = vmatpush3.msra.mxu0 %v3618_v53  ;;  %v3760_v45 = vand.u32 4294901760, %v338_v1  ;;  %v345_v57 = vsub.f32 %v3703_v22, %v3732_v60  ;;  %v3773_v30 = vld [vmem:[%s4802_s2 + $0x98] sm:$0xff] }
  0x19   :  { %5023 = vst [vmem:[#allocation37_spill] sm:$0xff] %v3706_v51  ;;  %5024 = vst [vmem:[#allocation38_spill] sm:$0xff] %v3713_v61  ;;  %v3765_v61 = vand.u32 4294901760, %v3736_v24  ;;  %v3768_v14 = vand.u32 4294901760, %v3725_v9  ;;  %3015 = vmatpush3.msra.mxu1 %v3743_v55  ;;  %2989 = vmatprep.subr.mxu0 %v3650_v63  ;;  %v3777_v1 = vand.u32 4294901760, %v226_v13  ;;  %v3786_v52 = vsub.f32 %v3548_v31, %v3591_v44 }
  0x1a   :  { %5025 = vst [vmem:[#allocation39_spill] sm:$0xff] %v3717_v2  ;;  %5026 = vst [vmem:[#allocation40_spill] sm:$0xff] %v3720_v23  ;;  %v3782_v58 = vand.u32 4294901760, %v3752_v46  ;;  %3016 = vmatprep.subr.mxu1 %v3760_v45  ;;  %2990 = vmatpush3.msra.mxu0 %v3668_v7  ;;  %v3795_v13 = vand.u32 4294901760, %v345_v57  ;;  %v3804_v31 = vsub.f32 %v3579_v40, %v3618_v53  ;;  %v3821_v40 = vand.u32 4294901760, %v3773_v30  ;;  %v3896_v53 = vld [vmem:[%s4802_s2 + $0x80] sm:$0xff] }
  0x1b   :  { %5027 = vst [vmem:[#allocation41_spill] sm:$0xff] %v3732_v60  ;;  %5028 = vst [vmem:[#allocation42_spill] sm:$0xff] %v3736_v24  ;;  %v233_v60 = vsub.f32 %v3717_v2, %v3748_v50  ;;  %3017 = vmatpush3.msra.mxu1 %v3777_v1  ;;  %2991 = vmatprep.subr.mxu0 %v3687_v16  ;;  %v3840_v36 = vand.u32 4294901760, %v3791_v47 }
  0x1c   :  { %5029 = vst [vmem:[#allocation43_spill] sm:$0xff] %v3739_v56  ;;  %5030 = vst [vmem:[#allocation44_spill] sm:$0xff] %v3743_v55  ;;  %v352_v55 = vsub.f32 %v3736_v24, %v3765_v61  ;;  %3018 = vmatprep.subr.mxu1 %v3795_v13  ;;  %2992 = vmatpush3.msra.mxu0 %v3706_v51 }
  0x1d   :  { %5031 = vst [vmem:[#allocation45_spill] sm:$0xff] %v3748_v50  ;;  %5032 = vst [vmem:[#allocation46_spill] sm:$0xff] %v3752_v46  ;;  %v3800_v50 = vand.u32 4294901760, %v3757_v29  ;;  %v3813_v57 = vand.u32 4294901760, %v233_v60  ;;  %2993 = vmatprep.subr.mxu0 %v3720_v23 }
  0x1e   :  { %5033 = vst [vmem:[#allocation47_spill] sm:$0xff] %v3760_v45  ;;  %5034 = vst [vmem:[#allocation48_spill] sm:$0xff] %v3765_v61  ;;  %v240_v45 = vsub.f32 %v3752_v46, %v3782_v58  ;;  %v3818_v61 = vand.u32 4294901760, %v3786_v52  ;;  %v3830_v60 = vand.u32 4294901760, %v352_v55  ;;  %2994 = vmatpush3.msra.mxu0 %v3739_v56 }
  0x1f   :  { %5035 = vst [vmem:[#allocation49_spill] sm:$0xff] %v3768_v14  ;;  %5036 = vst [vmem:[#allocation50_spill] sm:$0xff] %v3777_v1  ;;  %v3833_v1 = vand.u32 4294901760, %v3804_v31  ;;  %3019 = vmatpush3.msra.mxu1 %v3813_v57  ;;  %2995 = vmatprep.subr.mxu0 %v3768_v14 }
  0x20   :  { %5037 = vst [vmem:[#allocation51_spill] sm:$0xff] %v3782_v58  ;;  %5038 = vst [vmem:[#allocation52_spill] sm:$0xff] %v3786_v52  ;;  %v3837_v58 = vsub.f32 %v3607_v49, %v3650_v63  ;;  %v3849_v55 = vand.u32 4294901760, %v240_v45  ;;  %v3855_v49 = vsub.f32 %v3623_v54, %v3668_v7  ;;  %v3858_v63 = vand.u32 4294901760, %v3809_v42  ;;  %3020 = vmatprep.subr.mxu1 %v3830_v60  ;;  %v3877_v7 = vld [vmem:[%s4802_s2 + $0x8] sm:$0xff] }
  0x21   :  { %5039 = vst [vmem:[#allocation53_spill] sm:$0xff] %v3795_v13  ;;  %5040 = vst [vmem:[#allocation54_spill] sm:$0xff] %v3800_v50  ;;  %v359_v13 = vsub.f32 %v3786_v52, %v3818_v61  ;;  %v3872_v54 = vand.u32 4294901760, %v3826_v37  ;;  %2996 = vmatpush3.msra.mxu0 %v3800_v50  ;;  %v3918_v44 = vand.u32 4294901760, %v3877_v7 }
  0x22   :  { %5041 = vst [vmem:[#allocation55_spill] sm:$0xff] %v3804_v31  ;;  %5042 = vst [vmem:[#allocation56_spill] sm:$0xff] %v3813_v57  ;;  %v247_v57 = vsub.f32 %v3804_v31, %v3833_v1  ;;  %v3865_v45 = vand.u32 4294901760, %v3837_v58  ;;  %3021 = vmatpush3.msra.mxu1 %v3849_v55  ;;  %2997 = vmatprep.subr.mxu0 %v3821_v40 }
  0x23   :  { %5043 = vst [vmem:[#allocation57_spill] sm:$0xff] %v3818_v61  ;;  %5044 = vst [vmem:[#allocation58_spill] sm:$0xff] %v3821_v40  ;;  %v3869_v61 = vsub.f32 %v3638_v59, %v3687_v16  ;;  %v3888_v59 = vsub.f32 %v3655_v0, %v3706_v51  ;;  %v3891_v16 = vand.u32 4294901760, %v3845_v32  ;;  %v3908_v0 = vsub.f32 %v3673_v8, %v3720_v23  ;;  %v3927_v8 = vld [vmem:[%s4802_s2] sm:$0xff] }
  0x24   :  { %5045 = vst [vmem:[#allocation59_spill] sm:$0xff] %v3830_v60  ;;  %5046 = vst [vmem:[#allocation60_spill] sm:$0xff] %v3833_v1  ;;  %v3881_v60 = vand.u32 4294901760, %v359_v13  ;;  %v3884_v1 = vand.u32 4294901760, %v3855_v49  ;;  %v366_v13 = vsub.f32 %v3837_v58, %v3865_v45  ;;  %2998 = vmatpush3.msra.mxu0 %v3840_v36 }
  0x25   :  { %5047 = vst [vmem:[#allocation61_spill] sm:$0xff] %v3837_v58  ;;  %5048 = vst [vmem:[#allocation62_spill] sm:$0xff] %v3840_v36  ;;  %v3904_v31 = vand.u32 4294901760, %v3869_v61  ;;  %v3936_v23 = vand.u32 4294901760, %v3908_v0  ;;  %2999 = vmatprep.subr.mxu0 %v3858_v63 }
  0x26   :  { %5049 = vst [vmem:[#allocation63_spill] sm:$0xff] %v3849_v55  ;;  %5050 = vst [vmem:[#allocation64_spill] sm:$0xff] %v3855_v49  ;;  %v3899_v55 = vand.u32 4294901760, %v247_v57  ;;  %3022 = vmatprep.subr.mxu1 %v3881_v60  ;;  %v254_v51 = vsub.f32 %v3855_v49, %v3884_v1  ;;  %v3915_v57 = vand.u32 4294901760, %v3888_v59  ;;  %v3951_v49 = vsub.f32 %v3725_v9, %v3768_v14 }
  0x27   :  { %5051 = vst [vmem:[#allocation65_spill] sm:$0xff] %v3858_v63  ;;  %5052 = vst [vmem:[#allocation66_spill] sm:$0xff] %v3865_v45  ;;  %v3922_v45 = vsub.f32 %v3692_v41, %v3739_v56  ;;  %v3939_v41 = vand.u32 4294901760, %v3896_v53  ;;  %3000 = vmatpush3.msra.mxu0 %v3872_v54 }
  0x28   :  { %5053 = vst [vmem:[#allocation67_spill] sm:$0xff] %v3869_v61  ;;  %5054 = vst [vmem:[#allocation68_spill] sm:$0xff] %v3872_v54  ;;  %3023 = vmatpush3.msra.mxu1 %v3899_v55  ;;  %v3941_v56 = vand.u32 4294901760, %v254_v51  ;;  %v380_v51 = vsub.f32 %v3908_v0, %v3936_v23  ;;  %3001 = vmatprep.subr.mxu0 %v3891_v16 }
  0x29   :  { %5055 = vst [vmem:[#allocation69_spill] sm:$0xff] %v3881_v60  ;;  %5056 = vst [vmem:[#allocation70_spill] sm:$0xff] %v3884_v1  ;;  %v3930_v60 = vand.u32 4294901760, %v366_v13  ;;  %v373_v1 = vsub.f32 %v3869_v61, %v3904_v31  ;;  %v3947_v13 = vand.u32 4294901760, %v3922_v45  ;;  %v3960_v61 = vand.u32 4294901760, %v3927_v8  ;;  %3002 = vmatpush3.msra.mxu0 %v3918_v44 }
  0x2a   :  { %5057 = vst [vmem:[#allocation71_spill] sm:$0xff] %v3888_v59  ;;  %5058 = vst [vmem:[#allocation72_spill] sm:$0xff] %v3891_v16  ;;  %v3977_v14 = vand.u32 4294901760, %v380_v51  ;;  %3003 = vmatprep.subr.mxu0 %v3939_v41  ;;  %v3999_v51 = vld [vmem:[%s4800_s0] sm:$0xf] }
  0x2b   :  { %5059 = vst [vmem:[#allocation73_spill] sm:$0xff] %v3899_v55  ;;  %5060 = vst [vmem:[#allocation74_spill] sm:$0xff] %v3904_v31  ;;  %v261_v55 = vsub.f32 %v3888_v59, %v3915_v57  ;;  %3024 = vmatprep.subr.mxu1 %v3930_v60  ;;  %v3954_v31 = vand.u32 4294901760, %v373_v1  ;;  %v268_v1 = vsub.f32 %v3922_v45, %v3947_v13  ;;  %3004 = vmatpush3.msra.mxu0 %v3960_v61 }
  0x2c   :  { %5061 = vst [vmem:[#allocation75_spill] sm:$0xff] %v3908_v0  ;;  %5062 = vst [vmem:[#allocation76_spill] sm:$0xff] %v3915_v57  ;;  %v3964_v57 = vsub.f32 %v3757_v29, %v3800_v50  ;;  %3025 = vmatpush3.msra.mxu1 %v3941_v56  ;;  %3043 = vmatprep.subr.mxu0 %v3505_v21 }
  0x2d   :  { %5063 = vst [vmem:[#allocation77_spill] sm:$0xff] %v3918_v44  ;;  %5064 = vst [vmem:[#allocation78_spill] sm:$0xff] %v3922_v45  ;;  %v3967_v9 = vand.u32 4294901760, %v261_v55  ;;  %3026 = vmatprep.subr.mxu1 %v3954_v31  ;;  %v5078_v55 = vlaneseq  ;;  %v3991_v50 = vand.u32 4294901760, %v268_v1 }
  0x2e   :  { %5065 = vst [vmem:[#allocation79_spill] sm:$0xff] %v3930_v60  ;;  %5066 = vst [vmem:[#allocation80_spill] sm:$0xff] %v3936_v23  ;;  %v3973_v60 = vand.u32 4294901760, %v3951_v49  ;;  %v74_v23 = vunpack.c.0.s8 %v3494_v17  ;;  %v3981_v29 = vand.u32 4294901760, %v3964_v57 }
  0x2f   :  { %5067 = vst [vmem:[#allocation81_spill] sm:$0xff] %v3939_v41  ;;  %5068 = vst [vmem:[#allocation82_spill] sm:$0xff] %v3941_v56  ;;  %v3984_v56 = vshrl.u32 %v5078_v55, 7  ;;  %3027 = vmatpush3.msra.mxu1 %v3967_v9  ;;  %v4003_v55 = vsub.f32 %v3791_v47, %v3840_v36  ;;  %v4021_v47 = vsub.f32 %v3826_v37, %v3872_v54 }
  0x30   :  { %5069 = vst [vmem:[#allocation83_spill] sm:$0xff] %v3947_v13  ;;  %5070 = vst [vmem:[#allocation84_spill] sm:$0xff] %v3951_v49  ;;  %v3988_v13 = vsub.f32 %v3773_v30, %v3821_v40  ;;  %v387_v17 = vsub.f32 %v3951_v49, %v3973_v60  ;;  %v4007_v30 = vsub.f32 %v3809_v42, %v3858_v63  ;;  %3028 = vmatprep.subr.mxu1 %v3977_v14 }
  0x31   :  { %5071 = vst [vmem:[#allocation85_spill] sm:$0xff] %v3954_v31  ;;  %5072 = vst [vmem:[#allocation86_spill] sm:$0xff] %v3960_v61  ;;  %v275_v1 = vsub.f32 %v3964_v57, %v3981_v29  ;;  %3029 = vmatpush3.msra.mxu1 %v3991_v50  ;;  %v4044_v21 = vand.u32 4294901760, %v4021_v47 }
  0x32   :  { %5073 = vst [vmem:[#allocation87_spill] sm:$0xff] %v3964_v57  ;;  %5074 = vst [vmem:[#allocation88_spill] sm:$0xff] %v3967_v9  ;;  %v4014_v9 = vsub.s32 %v74_v23, %v3984_v56  ;;  %v4017_v31 = vand.u32 4294901760, %v3988_v13  ;;  %v4024_v42 = vand.u32 4294901760, %v387_v17  ;;  %v4035_v23 = vsub.f32 %v3845_v32, %v3891_v16 }
  0x33   :  { %5075 = vst [vmem:[#allocation89_spill] sm:$0xff] %v3973_v60  ;;  %5076 = vst [vmem:[#allocation90_spill] sm:$0xff] %v3977_v14  ;;  %v4028_v14 = vand.u32 4294901760, %v4003_v55 }
  0x34   :  { %5077 = vst [vmem:[#allocation91_spill] sm:$0xff] %v3981_v29  ;;  %5079 = vst [vmem:[#allocation92_spill] sm:$0xff] %v3984_v56  ;;  %v4031_v29 = vand.u32 4294901760, %v4007_v30  ;;  %v4037_v56 = vand.u32 4294901760, %v275_v1  ;;  %v78_v37 = vrot.slane %v3999_v51, %v4014_v9  ;;  %v394_v17 = vsub.f32 %v3988_v13, %v4017_v31  ;;  %3030 = vmatprep.subr.mxu1 %v4024_v42 }
  0x35   :  { %5080 = vst [vmem:[#allocation93_spill] sm:$0xff] %v3988_v13  ;;  %5081 = vst [vmem:[#allocation94_spill] sm:$0xff] %v3991_v50  ;;  %v282_v50 = vsub.f32 %v4003_v55, %v4028_v14  ;;  %v4052_v1 = vand.u32 4294901760, %v4035_v23 }
  0x36   :  { %5082 = vst [vmem:[#allocation95_spill] sm:$0xff] %v3999_v51  ;;  %5083 = vst [vmem:[#allocation96_spill] sm:$0xff] %v4003_v55  ;;  %v401_v32 = vsub.f32 %v4007_v30, %v4031_v29  ;;  %v4056_v51 = vsub.f32 %v3877_v7, %v3918_v44  ;;  %3031 = vmatpush3.msra.mxu1 %v4037_v56  ;;  %v4061_v60 = vand.u32 4294901760, %v394_v17 }
  0x37   :  { %5084 = vst [vmem:[#allocation97_spill] sm:$0xff] %v4007_v30  ;;  %5085 = vst [vmem:[#allocation98_spill] sm:$0xff] %v4014_v9  ;;  %v79_v9 = vcombine.high %v78_v37, %v78_v37  ;;  %v408_v16 = vsub.f32 %v4035_v23, %v4052_v1 }
  0x38   :  { %5086 = vst [vmem:[#allocation99_spill] sm:$0xff] %v4017_v31  ;;  %5087 = vst [vmem:[#allocation100_spill] sm:$0xff] %v4021_v47  ;;  %v4059_v31 = vand.u32 4294901760, %v78_v37  ;;  %v4072_v7 = vand.u32 4294901760, %v4056_v51  ;;  %3032 = vmatprep.subr.mxu1 %v4061_v60 }
  0x39   :  { %5088 = vst [vmem:[#allocation101_spill] sm:$0xff] %v4024_v42  ;;  %5089 = vst [vmem:[#allocation102_spill] sm:$0xff] %v4028_v14  ;;  %v289_v42 = vsub.f32 %v4021_v47, %v4044_v21  ;;  %v4065_v14 = vand.u32 4294901760, %v282_v50  ;;  %v4074_v44 = vand.u32 4294901760, %v79_v9  ;;  %v4084_v50 = vsub.f32 %v3896_v53, %v3939_v41 }
  0x3a   :  { %5090 = vst [vmem:[#allocation103_spill] sm:$0xff] %v4031_v29  ;;  %5091 = vst [vmem:[#allocation104_spill] sm:$0xff] %v4035_v23  ;;  %v4067_v29 = vand.u32 4294901760, %v401_v32  ;;  %v4078_v17 = vsub.f32 %v78_v37, %v4059_v31  ;;  %v4087_v32 = vand.u32 4294901760, %v408_v16 }
  0x3b   :  { %5092 = vst [vmem:[#allocation105_spill] sm:$0xff] %v4037_v56  ;;  %5093 = vst [vmem:[#allocation106_spill] sm:$0xff] %v4044_v21  ;;  %v4080_v56 = vand.u32 4294901760, %v289_v42  ;;  %3033 = vmatpush3.msra.mxu1 %v4065_v14  ;;  %v4093_v21 = vsub.f32 %v3927_v8, %v3960_v61  ;;  %v4096_v37 = vsub.f32 %v79_v9, %v4074_v44  ;;  %v4101_v53 = vand.u32 4294901760, %v4084_v50 }
  0x3c   :  { %5094 = vst [vmem:[#allocation107_spill] sm:$0xff] %v4052_v1  ;;  %5095 = vst [vmem:[#allocation108_spill] sm:$0xff] %v4056_v51  ;;  %v296_v1 = vsub.f32 %v4056_v51, %v4072_v7  ;;  %v4932_v42 = vand.u32 4294901760, %v4078_v17  ;;  %3034 = vmatprep.subr.mxu1 %v4067_v29  ;;  %419 = vmatprep.mubr.f32.mxu1 %v4074_v44 }
  0x3d   :  { %5096 = vst [vmem:[#allocation109_spill] sm:$0xff] %v4061_v60  ;;  %5097 = vst [vmem:[#allocation110_spill] sm:$0xff] %v4065_v14  ;;  %3035 = vmatpush3.msra.mxu1 %v4080_v56  ;;  %v4108_v14 = vand.u32 4294901760, %v4093_v21  ;;  %v4933_v8 = vand.u32 4294901760, %v4096_v37 }
  0x3e   :  { %5098 = vst [vmem:[#allocation111_spill] sm:$0xff] %v4067_v29  ;;  %5099 = vst [vmem:[#allocation112_spill] sm:$0xff] %v4072_v7  ;;  %v4105_v16 = vand.u32 4294901760, %v296_v1  ;;  %v187_v9 = vsub.f32 %v4078_v17, %v4932_v42  ;;  %3036 = vmatprep.subr.mxu1 %v4087_v32  ;;  %v415_v29 = vsub.f32 %v4084_v50, %v4101_v53 }
  0x3f   :  { %5100 = vst [vmem:[#allocation113_spill] sm:$0xff] %v4074_v44  ;;  %5101 = vst [vmem:[#allocation114_spill] sm:$0xff] %v4080_v56  ;;  %v303_v1 = vsub.f32 %v4093_v21, %v4108_v14  ;;  %v181_v56 = vsub.f32 %v4096_v37, %v4933_v8  ;;  %v5115_v8 = vld [vmem:[#allocation67_spill] sm:$0xff] }
  0x40   :  { %5102 = vst [vmem:[#allocation115_spill] sm:$0xff] %v4084_v50  ;;  %5103 = vst [vmem:[#allocation116_spill] sm:$0xff] %v4093_v21  ;;  %3037 = vmatpush3.msra.mxu1 %v4105_v16  ;;  %v4123_v60 = vand.u32 4294901760, %v415_v29  ;;  %v188_v7 = vand.u32 4294901760, %v187_v9  ;;  %v5110_v29 = vld [vmem:[#allocation55_spill] sm:$0xff]  ;;  %v5113_v9 = vld [vmem:[#allocation64_spill] sm:$0xff] }
  0x41   :  { %5104 = vst [vmem:[#allocation117_spill] sm:$0xff] %v4101_v53  ;;  %5105 = vst [vmem:[#allocation118_spill] sm:$0xff] %v4105_v16  ;;  %v4125_v44 = vand.u32 4294901760, %v303_v1  ;;  %v182_v42 = vand.u32 4294901760, %v181_v56  ;;  %v5109_v56 = vld [vmem:[#allocation15_spill] sm:$0xff]  ;;  %v5114_v1 = vld [vmem:[#allocation29_spill] sm:$0xff] }
  0x42   :  { %5106 = vst [vmem:[#allocation119_spill] sm:$0xff] %v4108_v14  ;;  %5107 = vst [vmem:[#allocation120_spill] sm:$0xff] %v4123_v60  ;;  %3038 = vmatprep.subr.mxu1 %v4123_v60 }
  0x43   :  { %5108 = vst [vmem:[#allocation121_spill] sm:$0xff] %v4125_v44  ;;  %3039 = vmatpush3.msra.mxu1 %v4125_v44  ;;  %183 = vmatprep.mubr.f32.mxu0 %v182_v42  ;;  %v5112_v42 = vld [vmem:[#allocation26_spill] sm:$0xff] }
  0x44   :  { %421 = vmatmul.mubr.f32.vlgmr.msra.gmra.mxu1 %v4059_v31  ;;  %189 = vmatmul.mubr.f32.vlgmr.msra.gmra.mxu0 %v188_v7  ;;  %v5111_v7 = vld [vmem:[#allocation20_spill] sm:$0xff] }
  0x45   :  { %3078 = vmatprep.subr.mxu1 %v3462_v3  ;;  %3044 = vmatpush3.msra.mxu0 %v3527_v26 }
  0x46   :  { %3079 = vmatpush3.msra.mxu1 %v3464_v4  ;;  %3045 = vmatprep.subr.mxu0 %v3533_v28 }
  0x47   :  { %3080 = vmatprep.subr.mxu1 %v3466_v5  ;;  %3046 = vmatpush3.msra.mxu0 %v3558_v34 }
  0x48   :  { %3081 = vmatpush3.msra.mxu1 %v3477_v10  ;;  %3047 = vmatprep.subr.mxu0 %v3571_v38 }
  0x49   :  { %3082 = vmatprep.subr.mxu1 %v3479_v11  ;;  %3048 = vmatpush3.msra.mxu0 %v3588_v43 }
  0x4a   :  { %3083 = vmatpush3.msra.mxu1 %v3481_v12  ;;  %3049 = vmatprep.subr.mxu0 %v3602_v48 }
  0x4b   :  { %3084 = vmatprep.subr.mxu1 %v3497_v18  ;;  %3050 = vmatpush3.msra.mxu0 %v3647_v62 }
  0x4c   :  { %3085 = vmatpush3.msra.mxu1 %v3499_v19  ;;  %3051 = vmatprep.subr.mxu0 %v3665_v6 }
  0x4d   :  { %3086 = vmatprep.subr.mxu1 %v3502_v20  ;;  %3052 = vmatpush3.msra.mxu0 %v3684_v15 }
  0x4e   :  { %3087 = vmatpush3.msra.mxu1 %v3524_v25  ;;  %3053 = vmatprep.subr.mxu0 %v3703_v22 }
  0x4f   :  { %3088 = vmatprep.subr.mxu1 %v3530_v27  ;;  %3054 = vmatpush3.msra.mxu0 %v3717_v2 }
  0x50   :  { %3089 = vmatpush3.msra.mxu1 %v3555_v33  ;;  %3055 = vmatprep.subr.mxu0 %v3736_v24 }
  0x51   :  { %3090 = vmatprep.subr.mxu1 %v3561_v35  ;;  %3056 = vmatpush3.msra.mxu0 %v3752_v46  ;;  %v5116_v46 = vld [vmem:[#allocation33_spill] sm:$0xff] }
  0x52   :  { %3091 = vmatpush3.msra.mxu1 %v3574_v39  ;;  %3057 = vmatprep.subr.mxu0 %v3786_v52  ;;  %v5117_v52 = vld [vmem:[#allocation37_spill] sm:$0xff] }
  0x53   :  { %3092 = vmatprep.subr.mxu1 %v5109_v56  ;;  %3058 = vmatpush3.msra.mxu0 %v5110_v29  ;;  %v5118_v29 = vld [vmem:[#allocation40_spill] sm:$0xff] }
  0x54   :  { %3093 = vmatpush3.msra.mxu1 %v5111_v7  ;;  %3059 = vmatprep.subr.mxu0 %v3837_v58  ;;  %v5119_v58 = vld [vmem:[#allocation43_spill] sm:$0xff] }
  0x55   :  { %3094 = vmatprep.subr.mxu1 %v5112_v42  ;;  %3060 = vmatpush3.msra.mxu0 %v5113_v9  ;;  %v5120_v9 = vld [vmem:[#allocation49_spill] sm:$0xff] }
  0x56   :  { %3095 = vmatpush3.msra.mxu1 %v5114_v1  ;;  %3061 = vmatprep.subr.mxu0 %v5115_v8 }
  0x57   :  { %3096 = vmatprep.subr.mxu1 %v5116_v46  ;;  %3062 = vmatpush3.msra.mxu0 %v3888_v59  ;;  %v5121_v59 = vld [vmem:[#allocation54_spill] sm:$0xff] }
  0x58   :  { %3097 = vmatpush3.msra.mxu1 %v5117_v52  ;;  %3063 = vmatprep.subr.mxu0 %v3908_v0 }
  0x59   :  { %3098 = vmatprep.subr.mxu1 %v5118_v29  ;;  %3064 = vmatpush3.msra.mxu0 %v3922_v45 }
  0x5a   :  { %3099 = vmatpush3.msra.mxu1 %v5119_v58  ;;  %3065 = vmatprep.subr.mxu0 %v3951_v49  ;;  %v5131_v49 = vld [vmem:[#allocation19_spill] sm:$0xff] }
  0x5b   :  { %3100 = vmatprep.subr.mxu1 %v5120_v9  ;;  %3066 = vmatpush3.msra.mxu0 %v3964_v57  ;;  %v5129_v57 = vand.u32 4294901760, %v4078_v17 }
  0x5c   :  { %556 = vmatprep.mubr.f32.mxu0 %v4096_v37  ;;  %3067 = vmatprep.subr.mxu0 %v3988_v13  ;;  %v5122_v13 = vld [vmem:[#allocation72_spill] sm:$0xff] }
  0x5d   :  { %3101 = vmatpush3.msra.mxu1 %v5121_v59  ;;  %3068 = vmatpush3.msra.mxu0 %v4003_v55  ;;  %v5123_v55 = vld [vmem:[#allocation77_spill] sm:$0xff] }
  0x5e   :  { %3102 = vmatprep.subr.mxu1 %v3821_v40  ;;  %3069 = vmatprep.subr.mxu0 %v4007_v30  ;;  %v5125_v30 = vld [vmem:[#allocation10_spill] sm:$0xff] }
  0x5f   :  { %3103 = vmatpush3.msra.mxu1 %v3840_v36  ;;  %3070 = vmatpush3.msra.mxu0 %v4021_v47  ;;  %v5124_v47 = vld [vmem:[#allocation8_spill] sm:$0xff] }
  0x60   :  { %3104 = vmatprep.subr.mxu1 %v3858_v63  ;;  %3071 = vmatprep.subr.mxu0 %v4035_v23  ;;  %v5126_v23 = vld [vmem:[#allocation11_spill] sm:$0xff] }
  0x61   :  { %3105 = vmatpush3.msra.mxu1 %v3872_v54  ;;  %3072 = vmatpush3.msra.mxu0 %v4056_v51  ;;  %v5127_v51 = vand.u32 4294901760, %v4096_v37  ;;  %v5137_v37 = vld [vmem:[#allocation45_spill] sm:$0xff] }
  0x62   :  { %3106 = vmatprep.subr.mxu1 %v5122_v13  ;;  %3073 = vmatprep.subr.mxu0 %v4084_v50  ;;  %v5128_v50 = vld [vmem:[#allocation13_spill] sm:$0xff] }
  0x63   :  { %3107 = vmatpush3.msra.mxu1 %v5123_v55  ;;  %3074 = vmatpush3.msra.mxu0 %v4093_v21  ;;  %v5130_v21 = vld [vmem:[#allocation16_spill] sm:$0xff] }
  0x64   :  { %3108 = vmatprep.subr.mxu1 %v3939_v41  ;;  %559 = vmatmul.mubr.f32.vlgmr.msra.gmra.mxu0 %v4078_v17  ;;  %v5136_v17 = vld [vmem:[#allocation41_spill] sm:$0xff] }
  0x65   :  { %3113 = vmatprep.subr.mxu0 %v5124_v47  ;;  %3109 = vmatpush3.msra.mxu1 %v3960_v61 }
  0x66   :  { %3114 = vmatpush3.msra.mxu0 %v5125_v30  ;;  %663 = vmatprep.mubr.f32.mxu1 %v5127_v51  ;;  %v5132_v30 = vld [vmem:[#allocation23_spill] sm:$0xff] }
  0x67   :  { %3115 = vmatprep.subr.mxu0 %v5126_v23  ;;  %667 = vmatmul.mubr.f32.vlgmr.msra.gmra.mxu1 %v5129_v57  ;;  %v5133_v23 = vld [vmem:[#allocation31_spill] sm:$0xff]  ;;  %v5135_v57 = vld [vmem:[#allocation38_spill] sm:$0xff] }
  0x68   :  { %3116 = vmatpush3.msra.mxu0 %v5128_v50  ;;  %3148 = vmatprep.subr.mxu1 %v3462_v3  ;;  %v5134_v51 = vld [vmem:[#allocation35_spill] sm:$0xff] }
  0x69   :  { %3117 = vmatprep.subr.mxu0 %v5130_v21  ;;  %3149 = vmatpush3.msra.mxu1 %v3464_v4  ;;  %v58_v21 = vld [vmem:[%s4803_s3 + $0x18] sm:$0xff] }
  0x6a   :  { %3118 = vmatpush3.msra.mxu0 %v5131_v49  ;;  %3150 = vmatprep.subr.mxu1 %v3466_v5  ;;  %v5155_v49 = vld [vmem:[#allocation107_spill] sm:$0xff]  ;;  %v4302_v47 = vand.u32 4294901760, %v58_v21 }
  0x6b   :  { %3119 = vmatprep.subr.mxu0 %v5132_v30  ;;  %3151 = vmatpush3.msra.mxu1 %v3477_v10  ;;  %v5138_v30 = vld [vmem:[#allocation48_spill] sm:$0xff] }
  0x6c   :  { %3120 = vmatpush3.msra.mxu0 %v5133_v23  ;;  %3152 = vmatprep.subr.mxu1 %v3479_v11  ;;  %v5139_v23 = vld [vmem:[#allocation51_spill] sm:$0xff]  ;;  %v4323_v22 = vsub.f32 %v58_v21, %v4302_v47 }
  0x6d   :  { %3121 = vmatprep.subr.mxu0 %v5134_v51  ;;  %3153 = vmatpush3.msra.mxu1 %v3481_v12  ;;  %v5140_v51 = vld [vmem:[#allocation57_spill] sm:$0xff] }
  0x6e   :  { %3122 = vmatpush3.msra.mxu0 %v5135_v57  ;;  %3154 = vmatprep.subr.mxu1 %v3497_v18  ;;  %v5141_v57 = vld [vmem:[#allocation60_spill] sm:$0xff]  ;;  %v4968_v38 = vand.u32 4294901760, %v4323_v22 }
  0x6f   :  { %3123 = vmatprep.subr.mxu0 %v5136_v17  ;;  %3155 = vmatpush3.msra.mxu1 %v3499_v19  ;;  %v5142_v17 = vld [vmem:[#allocation66_spill] sm:$0xff] }
  0x70   :  { %3124 = vmatpush3.msra.mxu0 %v5137_v37  ;;  %3156 = vmatprep.subr.mxu1 %v3502_v20  ;;  %v5143_v37 = vld [vmem:[#allocation70_spill] sm:$0xff] }
  0x71   :  { %3125 = vmatprep.subr.mxu0 %v5138_v30  ;;  %3157 = vmatpush3.msra.mxu1 %v3524_v25  ;;  %v5144_v30 = vld [vmem:[#allocation74_spill] sm:$0xff] }
  0x72   :  { %3126 = vmatpush3.msra.mxu0 %v5139_v23  ;;  %3158 = vmatprep.subr.mxu1 %v3530_v27  ;;  %v5145_v23 = vld [vmem:[#allocation76_spill] sm:$0xff] }
  0x73   :  { %3127 = vmatprep.subr.mxu0 %v5140_v51  ;;  %3159 = vmatpush3.msra.mxu1 %v3555_v33  ;;  %v5146_v51 = vld [vmem:[#allocation80_spill] sm:$0xff] }
  0x74   :  { %3128 = vmatpush3.msra.mxu0 %v5141_v57  ;;  %3160 = vmatprep.subr.mxu1 %v3561_v35  ;;  %v5147_v57 = vld [vmem:[#allocation83_spill] sm:$0xff] }
  0x75   :  { %3129 = vmatprep.subr.mxu0 %v5142_v17  ;;  %3161 = vmatpush3.msra.mxu1 %v3574_v39  ;;  %v5148_v17 = vld [vmem:[#allocation89_spill] sm:$0xff] }
  0x76   :  { %3130 = vmatpush3.msra.mxu0 %v5143_v37  ;;  %3162 = vmatprep.subr.mxu1 %v5109_v56  ;;  %v5149_v37 = vld [vmem:[#allocation91_spill] sm:$0xff] }
  0x77   :  { %3131 = vmatprep.subr.mxu0 %v5144_v30  ;;  %3163 = vmatpush3.msra.mxu1 %v5111_v7  ;;  %v5150_v30 = vld [vmem:[#allocation99_spill] sm:$0xff] }
  0x78   :  { %3132 = vmatpush3.msra.mxu0 %v5145_v23  ;;  %3164 = vmatprep.subr.mxu1 %v5112_v42  ;;  %v5151_v23 = vld [vmem:[#allocation102_spill] sm:$0xff] }
  0x79   :  { %3133 = vmatprep.subr.mxu0 %v5146_v51  ;;  %3165 = vmatpush3.msra.mxu1 %v5114_v1  ;;  %v5152_v51 = vld [vmem:[#allocation103_spill] sm:$0xff] }
  0x7a   :  { %3134 = vmatpush3.msra.mxu0 %v5147_v57  ;;  %3166 = vmatprep.subr.mxu1 %v5116_v46  ;;  %v5153_v57 = vld [vmem:[#allocation106_spill] sm:$0xff] }
  0x7b   :  { %3135 = vmatprep.subr.mxu0 %v5148_v17  ;;  %3167 = vmatpush3.msra.mxu1 %v5117_v52  ;;  %v5154_v17 = vld [vmem:[#allocation113_spill] sm:$0xff] }
  0x7c   :  { %3136 = vmatpush3.msra.mxu0 %v5149_v37  ;;  %3168 = vmatprep.subr.mxu1 %v5118_v29  ;;  %v5156_v37 = vld [vmem:[#allocation112_spill] sm:$0xff] }
  0x7d   :  { %3137 = vmatprep.subr.mxu0 %v5150_v30  ;;  %3169 = vmatpush3.msra.mxu1 %v5119_v58 }
  0x7e   :  { %3138 = vmatpush3.msra.mxu0 %v5151_v23  ;;  %3170 = vmatprep.subr.mxu1 %v5120_v9 }
  0x7f   :  { %3139 = vmatprep.subr.mxu0 %v5152_v51  ;;  %833 = vmatprep.mubr.f32.mxu0 %v5154_v17  ;;  %v59_v51 = vld [vmem:[%s4803_s3 + $0x20] sm:$0xff] }
  0x80   :  { %3140 = vmatpush3.msra.mxu0 %v5153_v57  ;;  %3171 = vmatpush3.msra.mxu1 %v5121_v59  ;;  %v4292_v30 = vand.u32 4294901760, %v59_v51 }
  0x81   :  { %3141 = vmatprep.subr.mxu0 %v5155_v49  ;;  %3172 = vmatprep.subr.mxu1 %v3821_v40 }
  0x82   :  { %3142 = vmatpush3.msra.mxu0 %v5156_v37  ;;  %3173 = vmatpush3.msra.mxu1 %v3840_v36  ;;  %v61_v37 = vld [vmem:[%s4803_s3 + $0x30] sm:$0xff]  ;;  %v4310_v0 = vsub.f32 %v59_v51, %v4292_v30  ;;  %v55_v51 = vld [vmem:[%s4803_s3] sm:$0xff] }
  0x83   :  { %3143 = vmatprep.subr.mxu0 %v4101_v53  ;;  %3174 = vmatprep.subr.mxu1 %v3858_v63  ;;  %v4275_v49 = vand.u32 4294901760, %v61_v37  ;;  %v4338_v2 = vand.u32 4294901760, %v55_v51 }
  0x84   :  { %3144 = vmatpush3.msra.mxu0 %v4108_v14  ;;  %3175 = vmatpush3.msra.mxu1 %v3872_v54  ;;  %v62_v14 = vld [vmem:[%s4803_s3 + $0x38] sm:$0xff]  ;;  %v4965_v62 = vand.u32 4294901760, %v4310_v0 }
  0x85   :  { %835 = vmatmul.mubr.f32.vlgmr.msra.gmra.mxu0 %v4059_v31  ;;  %3176 = vmatprep.subr.mxu1 %v5122_v13  ;;  %v4270_v53 = vand.u32 4294901760, %v62_v14  ;;  %v4290_v23 = vsub.f32 %v61_v37, %v4275_v49  ;;  %v57_v37 = vld [vmem:[%s4803_s3 + $0x10] sm:$0xff] }
  0x86   :  { %937 = vmatprep.mubr.f32.mxu1 %v5154_v17  ;;  %3177 = vmatpush3.msra.mxu1 %v5123_v55  ;;  %v60_v17 = vld [vmem:[%s4803_s3 + $0x28] sm:$0xff]  ;;  %v4312_v8 = vand.u32 4294901760, %v57_v37 }
  0x87   :  { %3178 = vmatprep.subr.mxu1 %v3939_v41  ;;  %v4281_v57 = vsub.f32 %v62_v14, %v4270_v53  ;;  %974 = vmatprep.subr.mxu0 %v4270_v53  ;;  %v5157_v15 = vand.u32 4294901760, %v4290_v23 }
  0x88   :  { %3179 = vmatpush3.msra.mxu1 %v3960_v61  ;;  %976 = vmatpush1.msra.mxu0 %v4275_v49 }
  0x89   :  { %939 = vmatmul.mubr.f32.vlgmr.msra.gmra.mxu1 %v4059_v31  ;;  %v4283_v31 = vand.u32 4294901760, %v60_v17  ;;  %v4958_v14 = vand.u32 4294901760, %v4281_v57  ;;  %v1066_v6 = vsub.f32 %v4290_v23, %v5157_v15 }
  0x8b   :  { %v4300_v50 = vsub.f32 %v60_v17, %v4283_v31  ;;  %978 = vmatprep.subr.mxu0 %v4283_v31  ;;  %v56_v17 = vld [vmem:[%s4803_s3 + $0x8] sm:$0xff]  ;;  %v1060_v24 = vsub.f32 %v4281_v57, %v4958_v14  ;;  %v4336_v14 = vsub.f32 %v57_v37, %v4312_v8  ;;  %v1067_v15 = vand.u32 4294901760, %v1066_v6 }
  0x8c   :  { %980 = vmatpush1.msra.mxu0 %v4292_v30  ;;  %v4325_v45 = vand.u32 4294901760, %v56_v17  ;;  %v1078_v37 = vsub.f32 %v4310_v0, %v4965_v62 }
  0x8d   :  { %982 = vmatprep.subr.mxu0 %v4302_v47  ;;  %v1061_v21 = vand.u32 4294901760, %v1060_v24  ;;  %v5158_v48 = vand.u32 4294901760, %v4300_v50  ;;  %v4969_v28 = vand.u32 4294901760, %v4336_v14  ;;  %v4354_v24 = vsub.f32 %v55_v51, %v4338_v2 }
  0x8e   :  { %984 = vmatpush1.msra.mxu0 %v4312_v8  ;;  %v4346_v34 = vsub.f32 %v56_v17, %v4325_v45  ;;  %v1084_v17 = vsub.f32 %v4323_v22, %v4968_v38  ;;  %v1079_v6 = vand.u32 4294901760, %v1078_v37 }
  0x8f   :  { %v1072_v43 = vsub.f32 %v4300_v50, %v5158_v48  ;;  %986 = vmatprep.subr.mxu0 %v4325_v45  ;;  %1062 = vmatprep.subr.mxu1 %v1061_v21  ;;  %v1090_v62 = vsub.f32 %v4336_v14, %v4969_v28  ;;  %v4973_v51 = vand.u32 4294901760, %v4354_v24  ;;  %v4984_v28 = vmov 0.0  }
  0x90   :  { %988 = vmatpush1.msra.mxu0 %v4338_v2  ;;  %v4970_v26 = vand.u32 4294901760, %v4346_v34  ;;  %1068 = vmatpush1.msra.mxu1 %v1067_v15  ;;  %v1085_v61 = vand.u32 4294901760, %v1084_v17 }
  0x91   :  { %v1073_v48 = vand.u32 4294901760, %v1072_v43  ;;  %1171 = vmatprep.subr.mxu0 %v4281_v57  ;;  %v1091_v21 = vand.u32 4294901760, %v1090_v62  ;;  %v1102_v38 = vsub.f32 %v4354_v24, %v4973_v51  ;;  %1137 = vmatprep.mubr.f32.mxu1 %v4984_v28 }
  0x92   :  { %v1096_v43 = vsub.f32 %v4346_v34, %v4970_v26  ;;  %1021 = vmatprep.mubr.f32.mxu0 %v4984_v28 }
  0x93   :  { %1074 = vmatprep.subr.mxu1 %v1073_v48  ;;  %v1103_v37 = vand.u32 4294901760, %v1102_v38 }
  0x94   :  { %1080 = vmatpush1.msra.mxu1 %v1079_v6  ;;  %v1097_v15 = vand.u32 4294901760, %v1096_v43 }
  0x95   :  { %1086 = vmatprep.subr.mxu1 %v1085_v61 }
  0x96   :  { %1092 = vmatpush1.msra.mxu1 %v1091_v21 }
  0x97   :  { %1098 = vmatprep.subr.mxu1 %v1097_v15 }
  0x98   :  { %1104 = vmatpush1.msra.mxu1 %v1103_v37 }
  0x99   :  { %1259 = vmatprep.subr.mxu1 %v4270_v53 }
 0x104   :  { %v3005_v48 = vpop.f32.mrf.mxu0  ;;  %v3040_v17 = vpop.f32.mrf.mxu1 }
 0x106   :  { %v3006_v62 = vpop.f32.mrf.mxu0  ;;  %v3041_v6 = vpop.f32.mrf.mxu1 }
 0x107   :  { %v3042_v61 = vadd.f32 %v3041_v6, %v3040_v17  ;;  %v3007_v21 = vadd.f32 %v3006_v62, %v3005_v48  ;;  %v5187_v48 = vld [vmem:[#allocation88_spill] sm:$0xff]  ;;  %v5188_v62 = vld [vmem:[#allocation90_spill] sm:$0xff] }
 0x109   :  { %v423_v37 = vadd.f32 %v3042_v61, %v3007_v21  ;;  %v5189_v61 = vld [vmem:[#allocation94_spill] sm:$0xff]  ;;  %v5191_v21 = vld [vmem:[#allocation105_spill] sm:$0xff] }
 0x124   :  { %v3075_v26 = vpop.f32.mrf.mxu0 }
 0x126   :  { %v3076_v51 = vpop.f32.mrf.mxu0 }
 0x127   :  { %v3110_v41 = vpop.f32.mrf.mxu1  ;;  %v3077_v38 = vadd.f32 %v3076_v51, %v3075_v26  ;;  %v5159_v26 = vmov 0.0   ;;  %v5186_v51 = vld [vmem:[#allocation85_spill] sm:$0xff] }
 0x129   :  { %v3111_v43 = vpop.f32.mrf.mxu1  ;;  %v561_v54 = vadd.f32 %v3077_v38, %v423_v37  ;;  %v5192_v38 = vld [vmem:[#allocation109_spill] sm:$0xff]  ;;  %v5194_v37 = vld [vmem:[#allocation111_spill] sm:$0xff] }
 0x12a   :  { %v3112_v55 = vadd.f32 %v3111_v43, %v3110_v41  ;;  %v5190_v43 = vld [vmem:[#allocation101_spill] sm:$0xff] }
 0x12c   :  { %v669_v40 = vadd.f32 %v3112_v55, %v561_v54  ;;  %v5167_v54 = vld [vmem:[#allocation22_spill] sm:$0xff]  ;;  %v5170_v55 = vand.u32 4294901760, %v4346_v34 }
 0x145   :  { %v3145_v15 = vpop.f32.mrf.mxu0 }
 0x147   :  { %v3146_v13 = vpop.f32.mrf.mxu0 }
 0x148   :  { %v3147_v63 = vadd.f32 %v3146_v13, %v3145_v15  ;;  %v5169_v13 = vld [vmem:[#allocation24_spill] sm:$0xff]  ;;  %v5193_v15 = vld [vmem:[#allocation110_spill] sm:$0xff] }
 0x149   :  { %v3180_v36 = vpop.f32.mrf.mxu1 }
 0x14a   :  { %v837_v44 = vadd.f32 %v3147_v63, %v669_v40  ;;  %v5161_v63 = vand.u32 4294901760, %v4290_v23  ;;  %v5162_v40 = vand.u32 4294901760, %v4300_v50 }
 0x14b   :  { %v3181_v28 = vpop.f32.mrf.mxu1 }
 0x14c   :  { %v3182_v59 = vadd.f32 %v3181_v28, %v3180_v36 }
 0x14e   :  { %v941_v60 = vadd.f32 %v3182_v59, %v837_v44  ;;  %v5160_v44 = vand.u32 4294901760, %v4281_v57  ;;  %v5168_v59 = vand.u32 4294901760, %v4336_v14  ;;  %v5182_v57 = vld [vmem:[#allocation69_spill] sm:$0xff] }
 0x150   :  { %v944_v9 = vmul.f32 0.125, %v941_v60  ;;  %v5163_v60 = vld [vmem:[#allocation18_spill] sm:$0xff] }
 0x152   :  { %v947_v16 = vsel %vm945_vm0, %v944_v9, 0  ;;  %v5181_v9 = vld [vmem:[#allocation63_spill] sm:$0xff] }
 0x153   :  { %v1022_v17 = vand.u32 4294901760, %v947_v16 }
 0x155   :  { %v1023_v6 = vsub.f32 %v947_v16, %v1022_v17  ;;  %1139 = vmatmul.mubr.f32.vlgmr.msra.gmra.mxu1 %v1022_v17  ;;  %v5179_v16 = vld [vmem:[#allocation56_spill] sm:$0xff] }
 0x156   :  { %1261 = vmatpush1.msra.mxu1 %v4275_v49  ;;  %1306 = vmatprep.mubr.f32.mxu1 %v5159_v26 }
 0x157   :  { %1263 = vmatprep.subr.mxu1 %v4283_v31  ;;  %v1024_v41 = vand.u32 4294901760, %v1023_v6 }
 0x158   :  { %1265 = vmatpush1.msra.mxu1 %v4292_v30 }
 0x159   :  { %1267 = vmatprep.subr.mxu1 %v4302_v47  ;;  %v1025_v28 = vsub.f32 %v1023_v6, %v1024_v41 }
 0x15a   :  { %1269 = vmatpush1.msra.mxu1 %v4312_v8 }
 0x15b   :  { %1271 = vmatprep.subr.mxu1 %v4325_v45  ;;  %v1026_v36 = vand.u32 4294901760, %v1025_v28  ;;  %v5198_v28 = vld [vmem:[#allocation120_spill] sm:$0xff] }
 0x15c   :  { %1273 = vmatpush1.msra.mxu1 %v4338_v2 }
 0x15d   :  { %1310 = vmatmul.mubr.f32.vlgmr.msra.gmra.mxu1 %v1024_v41  ;;  %1437 = vmatprep.subr.mxu1 %v4270_v53  ;;  %v5178_v53 = vld [vmem:[#allocation53_spill] sm:$0xff] }
 0x15e   :  { %1027 = vmatmul.mubr.f32.vlgmr.msra.gmra.mxu0 %v1026_v36  ;;  %1439 = vmatpush1.msra.mxu1 %v4275_v49  ;;  %v5164_v49 = vand.u32 4294901760, %v4310_v0  ;;  %v5197_v41 = vld [vmem:[#allocation49_spill] sm:$0xff]  ;;  %v5199_v36 = vld [vmem:[#allocation54_spill] sm:$0xff] }
 0x15f   :  { %1174 = vmatpush1.msra.mxu0 %v4290_v23  ;;  %1441 = vmatprep.subr.mxu1 %v4283_v31  ;;  %v5175_v23 = vld [vmem:[#allocation44_spill] sm:$0xff]  ;;  %v5183_v31 = vld [vmem:[#allocation73_spill] sm:$0xff] }
 0x160   :  { %1177 = vmatprep.subr.mxu0 %v4300_v50  ;;  %1443 = vmatpush1.msra.mxu1 %v4292_v30  ;;  %v5171_v30 = vld [vmem:[#allocation27_spill] sm:$0xff] }
 0x161   :  { %1180 = vmatpush1.msra.mxu0 %v4310_v0  ;;  %1445 = vmatprep.subr.mxu1 %v4302_v47  ;;  %v5172_v0 = vand.u32 4294901760, %v4354_v24  ;;  %v5173_v47 = vld [vmem:[#allocation30_spill] sm:$0xff]  ;;  %v5176_v50 = vld [vmem:[#allocation47_spill] sm:$0xff] }
 0x162   :  { %1183 = vmatprep.subr.mxu0 %v4323_v22  ;;  %1447 = vmatpush1.msra.mxu1 %v4312_v8  ;;  %v5180_v8 = vld [vmem:[#allocation59_spill] sm:$0xff] }
 0x163   :  { %1186 = vmatpush1.msra.mxu0 %v4336_v14  ;;  %1449 = vmatprep.subr.mxu1 %v4325_v45  ;;  %v5166_v45 = vand.u32 4294901760, %v4323_v22  ;;  %v5174_v22 = vld [vmem:[#allocation34_spill] sm:$0xff]  ;;  %v5184_v14 = vld [vmem:[#allocation79_spill] sm:$0xff] }
 0x164   :  { %1189 = vmatprep.subr.mxu0 %v4346_v34  ;;  %1225 = vmatprep.mubr.f32.mxu0 %v5159_v26  ;;  %v5177_v34 = vld [vmem:[#allocation50_spill] sm:$0xff] }
 0x165   :  { %1192 = vmatpush1.msra.mxu0 %v4354_v24  ;;  %1451 = vmatpush1.msra.mxu1 %v4338_v2  ;;  %v5165_v2 = vld [vmem:[#allocation21_spill] sm:$0xff]  ;;  %v5185_v24 = vld [vmem:[#allocation82_spill] sm:$0xff] }
 0x166   :  { %1484 = vmatprep.mubr.f32.mxu1 %v5159_v26  ;;  %1228 = vmatmul.mubr.f32.vlgmr.msra.gmra.mxu0 %v1023_v6  ;;  %v5196_v6 = vld [vmem:[#allocation118_spill] sm:$0xff] }
 0x167   :  { %1343 = vmatprep.subr.mxu0 %v5160_v44  ;;  %1486 = vmatmul.mubr.f32.vlgmr.msra.gmra.mxu1 %v1022_v17  ;;  %v5200_v44 = vld [vmem:[#allocation121_spill] sm:$0xff] }
 0x168   :  { %1347 = vmatpush1.msra.mxu0 %v5161_v63  ;;  %1404 = vmatprep.mubr.f32.mxu0 %v5159_v26  ;;  %v5201_v63 = vld [vmem:[#allocation58_spill] sm:$0xff] }
 0x169   :  { %1351 = vmatprep.subr.mxu0 %v5162_v40  ;;  %3218 = vmatprep.subr.mxu1 %v5163_v60  ;;  %v5202_v40 = vld [vmem:[#allocation62_spill] sm:$0xff]  ;;  %v5203_v60 = vld [vmem:[#allocation65_spill] sm:$0xff] }
 0x16a   :  { %1355 = vmatpush1.msra.mxu0 %v5164_v49  ;;  %3219 = vmatpush3.msra.mxu1 %v5165_v2  ;;  %v5205_v49 = vld [vmem:[#allocation72_spill] sm:$0xff]  ;;  %v5206_v2 = vld [vmem:[#allocation77_spill] sm:$0xff] }
 0x16b   :  { %1359 = vmatprep.subr.mxu0 %v5166_v45  ;;  %3220 = vmatprep.subr.mxu1 %v5167_v54  ;;  %v5207_v45 = vld [vmem:[#allocation81_spill] sm:$0xff]  ;;  %v5208_v54 = vld [vmem:[#allocation86_spill] sm:$0xff] }
 0x16c   :  { %1363 = vmatpush1.msra.mxu0 %v5168_v59  ;;  %3221 = vmatpush3.msra.mxu1 %v5169_v13  ;;  %v5209_v59 = vld [vmem:[#allocation5_spill] sm:$0xff] }
 0x16d   :  { %1367 = vmatprep.subr.mxu0 %v5170_v55  ;;  %3222 = vmatprep.subr.mxu1 %v5171_v30 }
 0x16e   :  { %1371 = vmatpush1.msra.mxu0 %v5172_v0  ;;  %3223 = vmatpush3.msra.mxu1 %v5173_v47 }
 0x16f   :  { %1406 = vmatmul.mubr.f32.vlgmr.msra.gmra.mxu0 %v1022_v17  ;;  %3224 = vmatprep.subr.mxu1 %v5174_v22  ;;  %v5195_v17 = vld [vmem:[#allocation114_spill] sm:$0xff] }
 0x170   :  { %3225 = vmatpush3.msra.mxu1 %v5175_v23  ;;  %3183 = vmatprep.subr.mxu0 %v3462_v3 }
 0x171   :  { %3226 = vmatprep.subr.mxu1 %v5176_v50  ;;  %3184 = vmatpush3.msra.mxu0 %v3464_v4 }
 0x172   :  { %3227 = vmatpush3.msra.mxu1 %v5177_v34  ;;  %3185 = vmatprep.subr.mxu0 %v3466_v5 }
 0x173   :  { %3228 = vmatprep.subr.mxu1 %v5178_v53  ;;  %3186 = vmatpush3.msra.mxu0 %v3477_v10 }
 0x174   :  { %3229 = vmatpush3.msra.mxu1 %v5179_v16  ;;  %3187 = vmatprep.subr.mxu0 %v3479_v11 }
 0x175   :  { %3230 = vmatprep.subr.mxu1 %v5180_v8  ;;  %3188 = vmatpush3.msra.mxu0 %v3481_v12 }
 0x176   :  { %3231 = vmatpush3.msra.mxu1 %v5181_v9  ;;  %3189 = vmatprep.subr.mxu0 %v3497_v18 }
 0x177   :  { %3232 = vmatprep.subr.mxu1 %v5182_v57  ;;  %3190 = vmatpush3.msra.mxu0 %v3499_v19 }
 0x178   :  { %3233 = vmatpush3.msra.mxu1 %v5183_v31  ;;  %3191 = vmatprep.subr.mxu0 %v3502_v20 }
 0x179   :  { %3234 = vmatprep.subr.mxu1 %v5184_v14  ;;  %3192 = vmatpush3.msra.mxu0 %v3524_v25 }
 0x17a   :  { %3235 = vmatpush3.msra.mxu1 %v5185_v24  ;;  %3193 = vmatprep.subr.mxu0 %v3530_v27 }
 0x17b   :  { %3236 = vmatprep.subr.mxu1 %v5186_v51  ;;  %3194 = vmatpush3.msra.mxu0 %v3555_v33 }
 0x17c   :  { %3237 = vmatpush3.msra.mxu1 %v5187_v48  ;;  %3195 = vmatprep.subr.mxu0 %v3561_v35 }
 0x17d   :  { %3238 = vmatprep.subr.mxu1 %v5188_v62  ;;  %3196 = vmatpush3.msra.mxu0 %v3574_v39 }
 0x17e   :  { %3239 = vmatpush3.msra.mxu1 %v5189_v61  ;;  %3197 = vmatprep.subr.mxu0 %v5109_v56 }
 0x17f   :  { %3240 = vmatprep.subr.mxu1 %v5190_v43  ;;  %3198 = vmatpush3.msra.mxu0 %v5111_v7 }
 0x180   :  { %3241 = vmatpush3.msra.mxu1 %v5191_v21  ;;  %3199 = vmatprep.subr.mxu0 %v5112_v42 }
 0x181   :  { %3242 = vmatprep.subr.mxu1 %v5192_v38  ;;  %3200 = vmatpush3.msra.mxu0 %v5114_v1  ;;  %v5210_v38 = vld [vmem:[#allocation98_spill] sm:$0xff] }
 0x182   :  { %3243 = vmatpush3.msra.mxu1 %v5193_v15  ;;  %3201 = vmatprep.subr.mxu0 %v5116_v46 }
 0x183   :  { %3244 = vmatprep.subr.mxu1 %v5194_v37  ;;  %3202 = vmatpush3.msra.mxu0 %v5117_v52  ;;  %v5211_v37 = vld [vmem:[#allocation95_spill] sm:$0xff] }
 0x184   :  { %3245 = vmatpush3.msra.mxu1 %v5195_v17  ;;  %3203 = vmatprep.subr.mxu0 %v5118_v29 }
 0x185   :  { %3246 = vmatprep.subr.mxu1 %v4087_v32  ;;  %3204 = vmatpush3.msra.mxu0 %v5119_v58  ;;  %v5204_v32 = vld [vmem:[#allocation68_spill] sm:$0xff] }
 0x186   :  { %3247 = vmatpush3.msra.mxu1 %v5196_v6  ;;  %3205 = vmatprep.subr.mxu0 %v5197_v41 }
 0x187   :  { %3248 = vmatprep.subr.mxu1 %v5198_v28  ;;  %3206 = vmatpush3.msra.mxu0 %v5199_v36 }
 0x188   :  { %3249 = vmatpush3.msra.mxu1 %v5200_v44  ;;  %3207 = vmatprep.subr.mxu0 %v5201_v63 }
 0x189   :  { %3288 = vmatprep.subr.mxu1 %v3462_v3  ;;  %3208 = vmatpush3.msra.mxu0 %v5202_v40 }
 0x18a   :  { %3209 = vmatprep.subr.mxu0 %v5203_v60 }
 0x18b   :  { %3210 = vmatpush3.msra.mxu0 %v5204_v32 }
 0x18c   :  { %3211 = vmatprep.subr.mxu0 %v5205_v49 }
 0x18d   :  { %3212 = vmatpush3.msra.mxu0 %v5206_v2 }
 0x18e   :  { %3213 = vmatprep.subr.mxu0 %v5207_v45 }
 0x18f   :  { %3214 = vmatpush3.msra.mxu0 %v5208_v54 }
 0x190   :  { %3253 = vmatprep.subr.mxu0 %v5209_v59 }
 0x215   :  { %v1140_v55 = vpop.f32.mrf.mxu1 }
 0x217   :  { %v1142_v47 = vpop.f32.mrf.mxu1 }
 0x21d   :  { %v1311_v23 = vpop.f32.mrf.mxu1 }
 0x21e   :  { %v1028_v13 = vpop.f32.mrf.mxu0 }
 0x21f   :  { %v1141_v22 = vadd.f32 %v1140_v55, %v1028_v13  ;;  %v1313_v8 = vpop.f32.mrf.mxu1 }
 0x220   :  { %v1030_v30 = vpop.f32.mrf.mxu0 }
 0x221   :  { %v1143_v34 = vadd.f32 %v1142_v47, %v1030_v30 }
 0x226   :  { %v1229_v0 = vpop.f32.mrf.mxu0 }
 0x227   :  { %v1230_v53 = vadd.f32 %v1229_v0, %v1141_v22  ;;  %v1487_v57 = vpop.f32.mrf.mxu1 }
 0x228   :  { %v1231_v50 = vpop.f32.mrf.mxu0 }
 0x229   :  { %v1232_v16 = vadd.f32 %v1231_v50, %v1143_v34  ;;  %v1312_v9 = vadd.f32 %v1311_v23, %v1230_v53  ;;  %v1489_v62 = vpop.f32.mrf.mxu1  ;;  %v5212_v53 = vld [vmem:[#allocation6_spill] sm:$0xff] }
 0x22b   :  { %v1314_v24 = vadd.f32 %v1313_v8, %v1232_v16  ;;  %v5213_v16 = vld [vmem:[#allocation7_spill] sm:$0xff]  ;;  %v5214_v8 = vld [vmem:[#allocation9_spill] sm:$0xff] }
 0x22f   :  { %v1407_v31 = vpop.f32.mrf.mxu0 }
 0x230   :  { %v1408_v14 = vadd.f32 %v1407_v31, %v1312_v9  ;;  %v5215_v9 = vld [vmem:[#allocation12_spill] sm:$0xff]  ;;  %v5217_v31 = vld [vmem:[#allocation17_spill] sm:$0xff] }
 0x231   :  { %v1409_v51 = vpop.f32.mrf.mxu0 }
 0x232   :  { %v1410_v48 = vadd.f32 %v1409_v51, %v1314_v24  ;;  %v1488_v61 = vadd.f32 %v1487_v57, %v1408_v14  ;;  %v5216_v57 = vld [vmem:[#allocation14_spill] sm:$0xff]  ;;  %v5218_v14 = vld [vmem:[#allocation25_spill] sm:$0xff]  ;;  %v5219_v24 = vld [vmem:[#allocation28_spill] sm:$0xff] }
 0x233   :  { %v5220_v51 = vld [vmem:[#allocation32_spill] sm:$0xff] }
 0x234   :  { %v1490_v43 = vadd.f32 %v1489_v62, %v1410_v48  ;;  %v5221_v48 = vld [vmem:[#allocation36_spill] sm:$0xff]  ;;  %v5222_v62 = vld [vmem:[#allocation39_spill] sm:$0xff] }
 0x236   :  { %v1494_v21 = vcombine.low %v1488_v61, %v1490_v43  ;;  %v5223_v61 = vld [vmem:[#allocation42_spill] sm:$0xff] }
 0x237   :  { %v5224_v43 = vld [vmem:[#allocation46_spill] sm:$0xff] }
 0x238   :  { %v1501_v15 = vrot.slane %v1494_v21, %v5210_v38  ;;  %v5225_v21 = vld [vmem:[#allocation52_spill] sm:$0xff] }
 0x23a   :  { %v4486_v17 = vsub.f32 %v5211_v37, %v1501_v15  ;;  %v5226_v15 = vld [vmem:[#allocation55_spill] sm:$0xff]  ;;  %v5227_v37 = vld [vmem:[#allocation61_spill] sm:$0xff] }
 0x23c   :  { %v1504_v6 = vmul.f32 %v4486_v17, %v4486_v17 }
 0x23e   :  { %v1512_v28 = vrot.slane %v1504_v6, %v5210_v38  ;;  %v5228_v6 = vld [vmem:[#allocation64_spill] sm:$0xff] }
 0x240   :  { %v1513_v44 = vcombine.high %v1512_v28, %v1512_v28  ;;  %v4491_v59 = vand.u32 4294901760, %v1512_v28 }
 0x242   :  { %v4493_v13 = vand.u32 4294901760, %v1513_v44  ;;  %v4496_v55 = vsub.f32 %v1512_v28, %v4491_v59  ;;  %v5229_v28 = vld [vmem:[#allocation67_spill] sm:$0xff] }
 0x244   :  { %1853 = vmatprep.mubr.f32.mxu1 %v4493_v13  ;;  %v1613_v30 = vsub.f32 %v1513_v44, %v4493_v13  ;;  %v1620_v0 = vand.u32 4294901760, %v4496_v55  ;;  %v5230_v44 = vld [vmem:[#allocation71_spill] sm:$0xff] }
 0x245   :  { %1855 = vmatmul.mubr.f32.vlgmr.msra.gmra.mxu1 %v4491_v59 }
 0x246   :  { %3289 = vmatpush3.msra.mxu1 %v3464_v4  ;;  %v1614_v47 = vand.u32 4294901760, %v1613_v30  ;;  %v1621_v22 = vsub.f32 %v4496_v55, %v1620_v0 }
 0x247   :  { %3290 = vmatprep.subr.mxu1 %v3466_v5 }
 0x248   :  { %3291 = vmatpush3.msra.mxu1 %v3477_v10  ;;  %2097 = vmatprep.mubr.f32.mxu1 %v1614_v47  ;;  %v1615_v23 = vsub.f32 %v1613_v30, %v1614_v47  ;;  %v1622_v34 = vand.u32 4294901760, %v1621_v22  ;;  %v5232_v47 = vld [vmem:[#allocation78_spill] sm:$0xff]  ;;  %v5233_v22 = vld [vmem:[#allocation84_spill] sm:$0xff] }
 0x249   :  { %3292 = vmatprep.subr.mxu1 %v3479_v11 }
 0x24a   :  { %3293 = vmatpush3.msra.mxu1 %v3481_v12  ;;  %v1616_v50 = vand.u32 4294901760, %v1615_v23  ;;  %v5234_v23 = vld [vmem:[#allocation87_spill] sm:$0xff] }
 0x24b   :  { %3294 = vmatprep.subr.mxu1 %v3497_v18 }
 0x24c   :  { %3295 = vmatpush3.msra.mxu1 %v3499_v19  ;;  %1617 = vmatprep.mubr.f32.mxu0 %v1616_v50  ;;  %v5235_v50 = vld [vmem:[#allocation93_spill] sm:$0xff] }
 0x24d   :  { %3296 = vmatprep.subr.mxu1 %v3502_v20  ;;  %1623 = vmatmul.mubr.f32.vlgmr.msra.gmra.mxu0 %v1622_v34  ;;  %v5236_v34 = vld [vmem:[#allocation96_spill] sm:$0xff] }
 0x24e   :  { %3254 = vmatpush3.msra.mxu0 %v5212_v53  ;;  %3297 = vmatpush3.msra.mxu1 %v3524_v25  ;;  %v5237_v53 = vld [vmem:[#allocation97_spill] sm:$0xff] }
 0x24f   :  { %3255 = vmatprep.subr.mxu0 %v5213_v16  ;;  %1990 = vmatprep.mubr.f32.mxu0 %v1613_v30  ;;  %v5231_v30 = vld [vmem:[#allocation75_spill] sm:$0xff]  ;;  %v5238_v16 = vld [vmem:[#allocation100_spill] sm:$0xff] }
 0x250   :  { %3298 = vmatprep.subr.mxu1 %v3530_v27  ;;  %3256 = vmatpush3.msra.mxu0 %v5214_v8  ;;  %v5239_v8 = vld [vmem:[#allocation104_spill] sm:$0xff] }
 0x251   :  { %3299 = vmatpush3.msra.mxu1 %v3555_v33  ;;  %3257 = vmatprep.subr.mxu0 %v5215_v9  ;;  %v5274_v9 = vld [vmem:[#allocation119_spill] sm:$0xff] }
 0x252   :  { %3300 = vmatprep.subr.mxu1 %v3561_v35  ;;  %3258 = vmatpush3.msra.mxu0 %v5216_v57 }
 0x253   :  { %3301 = vmatpush3.msra.mxu1 %v3574_v39  ;;  %3259 = vmatprep.subr.mxu0 %v5217_v31  ;;  %v69_v31 = vld [vmem:[%s4804_s4 + $0x30] sm:$0xff] }
 0x254   :  { %3302 = vmatprep.subr.mxu1 %v5109_v56  ;;  %3260 = vmatpush3.msra.mxu0 %v5218_v14  ;;  %v4648_v14 = vand.u32 4294901760, %v69_v31 }
 0x255   :  { %3303 = vmatpush3.msra.mxu1 %v5111_v7  ;;  %3261 = vmatprep.subr.mxu0 %v5219_v24  ;;  %v68_v24 = vld [vmem:[%s4804_s4 + $0x28] sm:$0xff] }
 0x256   :  { %3304 = vmatprep.subr.mxu1 %v5112_v42  ;;  %3262 = vmatpush3.msra.mxu0 %v5220_v51  ;;  %v66_v51 = vld [vmem:[%s4804_s4 + $0x18] sm:$0xff] }
 0x257   :  { %3305 = vmatpush3.msra.mxu1 %v5114_v1  ;;  %3263 = vmatprep.subr.mxu0 %v5221_v48 }
 0x258   :  { %3306 = vmatprep.subr.mxu1 %v5116_v46  ;;  %3264 = vmatpush3.msra.mxu0 %v5222_v62  ;;  %v4662_v62 = vand.u32 4294901760, %v68_v24 }
 0x259   :  { %3307 = vmatpush3.msra.mxu1 %v5117_v52  ;;  %3265 = vmatprep.subr.mxu0 %v5223_v61 }
 0x25a   :  { %3308 = vmatprep.subr.mxu1 %v5118_v29  ;;  %3266 = vmatpush3.msra.mxu0 %v5224_v43  ;;  %v4666_v43 = vand.u32 4294901760, %v66_v51 }
 0x25b   :  { %3309 = vmatpush3.msra.mxu1 %v5119_v58  ;;  %3267 = vmatprep.subr.mxu0 %v5225_v21  ;;  %v65_v21 = vld [vmem:[%s4804_s4 + $0x10] sm:$0xff] }
 0x25c   :  { %3310 = vmatprep.subr.mxu1 %v5197_v41  ;;  %3268 = vmatpush3.msra.mxu0 %v5226_v15  ;;  %v64_v15 = vld [vmem:[%s4804_s4 + $0x8] sm:$0xff] }
 0x25d   :  { %3311 = vmatpush3.msra.mxu1 %v5199_v36  ;;  %3269 = vmatprep.subr.mxu0 %v5227_v37  ;;  %v63_v37 = vld [vmem:[%s4804_s4] sm:$0xff] }
 0x25e   :  { %3312 = vmatprep.subr.mxu1 %v5201_v63  ;;  %3270 = vmatpush3.msra.mxu0 %v5228_v6  ;;  %v4679_v6 = vsub.f32 %v69_v31, %v4648_v14 }
 0x25f   :  { %3313 = vmatpush3.msra.mxu1 %v5202_v40  ;;  %3271 = vmatprep.subr.mxu0 %v5229_v28  ;;  %v4681_v28 = vand.u32 4294901760, %v65_v21 }
 0x260   :  { %3314 = vmatprep.subr.mxu1 %v5203_v60  ;;  %3272 = vmatpush3.msra.mxu0 %v5230_v44  ;;  %v4683_v44 = vand.u32 4294901760, %v64_v15 }
 0x261   :  { %3315 = vmatpush3.msra.mxu1 %v5204_v32  ;;  %3273 = vmatprep.subr.mxu0 %v5231_v30  ;;  %v4685_v30 = vand.u32 4294901760, %v63_v37 }
 0x262   :  { %3316 = vmatprep.subr.mxu1 %v5205_v49  ;;  %3274 = vmatpush3.msra.mxu0 %v5232_v47 }
 0x263   :  { %3317 = vmatpush3.msra.mxu1 %v5206_v2  ;;  %3275 = vmatprep.subr.mxu0 %v5233_v22  ;;  %v4690_v22 = vsub.f32 %v68_v24, %v4662_v62 }
 0x264   :  { %3318 = vmatprep.subr.mxu1 %v5207_v45  ;;  %3276 = vmatpush3.msra.mxu0 %v5234_v23 }
 0x265   :  { %3319 = vmatpush3.msra.mxu1 %v5208_v54  ;;  %3277 = vmatprep.subr.mxu0 %v5235_v50  ;;  %v4696_v50 = vsub.f32 %v66_v51, %v4666_v43 }
 0x266   :  { %2101 = vmatmul.mubr.f32.vlgmr.msra.gmra.mxu1 %v1620_v0  ;;  %3358 = vmatprep.subr.mxu1 %v3462_v3  ;;  %v5240_v0 = vld [vmem:[#allocation108_spill] sm:$0xff]  ;;  %v5241_v3 = vld [vmem:[#allocation115_spill] sm:$0xff] }
 0x267   :  { %3278 = vmatpush3.msra.mxu0 %v5236_v34  ;;  %3359 = vmatpush3.msra.mxu1 %v3464_v4  ;;  %v5242_v4 = vld [vmem:[#allocation116_spill] sm:$0xff]  ;;  %v2500_v34 = vand.u32 4294901760, %v4679_v6 }
 0x268   :  { %2371 = vmatprep.mubr.f32.mxu1 %v4493_v13  ;;  %3279 = vmatprep.subr.mxu0 %v5237_v53  ;;  %v4701_v53 = vsub.f32 %v65_v21, %v4681_v28 }
 0x269   :  { %3360 = vmatprep.subr.mxu1 %v3466_v5  ;;  %3280 = vmatpush3.msra.mxu0 %v5238_v16  ;;  %v5243_v5 = vld [vmem:[#allocation8_spill] sm:$0xff]  ;;  %v4704_v16 = vsub.f32 %v64_v15, %v4683_v44 }
 0x26a   :  { %3361 = vmatpush3.msra.mxu1 %v3477_v10  ;;  %3281 = vmatprep.subr.mxu0 %v5239_v8  ;;  %v5244_v10 = vld [vmem:[#allocation10_spill] sm:$0xff]  ;;  %v4707_v8 = vsub.f32 %v63_v37, %v4685_v30 }
 0x26b   :  { %3362 = vmatprep.subr.mxu1 %v3479_v11  ;;  %3282 = vmatpush3.msra.mxu0 %v5240_v0  ;;  %v5245_v11 = vld [vmem:[#allocation11_spill] sm:$0xff] }
 0x26c   :  { %3363 = vmatpush3.msra.mxu1 %v3481_v12  ;;  %3283 = vmatprep.subr.mxu0 %v5241_v3  ;;  %v5246_v12 = vld [vmem:[#allocation13_spill] sm:$0xff]  ;;  %v2506_v3 = vand.u32 4294901760, %v4690_v22 }
 0x26d   :  { %3364 = vmatprep.subr.mxu1 %v3497_v18  ;;  %3284 = vmatpush3.msra.mxu0 %v5242_v4  ;;  %v5247_v18 = vld [vmem:[#allocation16_spill] sm:$0xff] }
 0x26e   :  { %3365 = vmatpush3.msra.mxu1 %v3499_v19  ;;  %1993 = vmatmul.mubr.f32.vlgmr.msra.gmra.mxu0 %v4496_v55  ;;  %v5248_v19 = vld [vmem:[#allocation19_spill] sm:$0xff]  ;;  %v5272_v55 = vld [vmem:[#allocation112_spill] sm:$0xff] }
 0x26f   :  { %3323 = vmatprep.subr.mxu0 %v5243_v5  ;;  %3366 = vmatprep.subr.mxu1 %v3502_v20  ;;  %v5249_v20 = vld [vmem:[#allocation23_spill] sm:$0xff]  ;;  %v2518_v5 = vand.u32 4294901760, %v4696_v50 }
 0x270   :  { %3324 = vmatpush3.msra.mxu0 %v5244_v10  ;;  %2267 = vmatprep.mubr.f32.mxu0 %v4493_v13  ;;  %v5269_v13 = vld [vmem:[#allocation103_spill] sm:$0xff]  ;;  %v2501_v10 = vsub.f32 %v4679_v6, %v2500_v34 }
 0x271   :  { %3367 = vmatpush3.msra.mxu1 %v3524_v25  ;;  %3325 = vmatprep.subr.mxu0 %v5245_v11  ;;  %v5250_v25 = vld [vmem:[#allocation31_spill] sm:$0xff]  ;;  %v2524_v11 = vand.u32 4294901760, %v4701_v53 }
 0x272   :  { %3368 = vmatprep.subr.mxu1 %v3530_v27  ;;  %3326 = vmatpush3.msra.mxu0 %v5246_v12  ;;  %v5251_v27 = vld [vmem:[#allocation35_spill] sm:$0xff]  ;;  %v2530_v12 = vand.u32 4294901760, %v4704_v16 }
 0x273   :  { %3369 = vmatpush3.msra.mxu1 %v3555_v33  ;;  %3327 = vmatprep.subr.mxu0 %v5247_v18  ;;  %v5252_v33 = vld [vmem:[#allocation38_spill] sm:$0xff]  ;;  %v2536_v18 = vand.u32 4294901760, %v4707_v8 }
 0x274   :  { %3370 = vmatprep.subr.mxu1 %v3561_v35  ;;  %3328 = vmatpush3.msra.mxu0 %v5248_v19  ;;  %v5253_v35 = vld [vmem:[#allocation41_spill] sm:$0xff] }
 0x275   :  { %3371 = vmatpush3.msra.mxu1 %v3574_v39  ;;  %3329 = vmatprep.subr.mxu0 %v5249_v20  ;;  %v5254_v39 = vld [vmem:[#allocation45_spill] sm:$0xff]  ;;  %v2507_v20 = vsub.f32 %v4690_v22, %v2506_v3 }
 0x276   :  { %3372 = vmatprep.subr.mxu1 %v5109_v56  ;;  %3330 = vmatpush3.msra.mxu0 %v5250_v25  ;;  %v5255_v56 = vld [vmem:[#allocation48_spill] sm:$0xff] }
 0x277   :  { %3373 = vmatpush3.msra.mxu1 %v5111_v7  ;;  %3331 = vmatprep.subr.mxu0 %v5251_v27  ;;  %v5256_v7 = vld [vmem:[#allocation51_spill] sm:$0xff]  ;;  %v2519_v27 = vsub.f32 %v4696_v50, %v2518_v5 }
 0x278   :  { %3374 = vmatprep.subr.mxu1 %v5112_v42  ;;  %3332 = vmatpush3.msra.mxu0 %v5252_v33  ;;  %v5257_v42 = vld [vmem:[#allocation57_spill] sm:$0xff]  ;;  %v2502_v33 = vand.u32 4294901760, %v2501_v10 }
 0x279   :  { %3375 = vmatpush3.msra.mxu1 %v5114_v1  ;;  %3333 = vmatprep.subr.mxu0 %v5253_v35  ;;  %v5258_v1 = vld [vmem:[#allocation60_spill] sm:$0xff]  ;;  %v2525_v35 = vsub.f32 %v4701_v53, %v2524_v11 }
 0x27a   :  { %3376 = vmatprep.subr.mxu1 %v5116_v46  ;;  %3334 = vmatpush3.msra.mxu0 %v5254_v39  ;;  %v5259_v46 = vld [vmem:[#allocation66_spill] sm:$0xff]  ;;  %v2531_v39 = vsub.f32 %v4704_v16, %v2530_v12 }
 0x27b   :  { %3377 = vmatpush3.msra.mxu1 %v5117_v52  ;;  %3335 = vmatprep.subr.mxu0 %v5255_v56  ;;  %v5260_v52 = vld [vmem:[#allocation70_spill] sm:$0xff]  ;;  %v2537_v56 = vsub.f32 %v4707_v8, %v2536_v18 }
 0x27c   :  { %3378 = vmatprep.subr.mxu1 %v5118_v29  ;;  %3336 = vmatpush3.msra.mxu0 %v5256_v7  ;;  %v5261_v29 = vld [vmem:[#allocation74_spill] sm:$0xff]  ;;  %v2508_v7 = vand.u32 4294901760, %v2507_v20 }
 0x27d   :  { %3379 = vmatpush3.msra.mxu1 %v5119_v58  ;;  %3337 = vmatprep.subr.mxu0 %v5257_v42  ;;  %v5262_v58 = vld [vmem:[#allocation76_spill] sm:$0xff] }
 0x27e   :  { %3380 = vmatprep.subr.mxu1 %v5197_v41  ;;  %3338 = vmatpush3.msra.mxu0 %v5258_v1  ;;  %v5263_v41 = vld [vmem:[#allocation80_spill] sm:$0xff]  ;;  %v2520_v1 = vand.u32 4294901760, %v2519_v27 }
 0x27f   :  { %3381 = vmatpush3.msra.mxu1 %v5199_v36  ;;  %3339 = vmatprep.subr.mxu0 %v5259_v46  ;;  %v5264_v36 = vld [vmem:[#allocation83_spill] sm:$0xff]  ;;  %v2526_v46 = vand.u32 4294901760, %v2525_v35 }
 0x280   :  { %3382 = vmatprep.subr.mxu1 %v5201_v63  ;;  %3340 = vmatpush3.msra.mxu0 %v5260_v52  ;;  %v5265_v63 = vld [vmem:[#allocation89_spill] sm:$0xff]  ;;  %v2532_v52 = vand.u32 4294901760, %v2531_v39 }
 0x281   :  { %3383 = vmatpush3.msra.mxu1 %v5202_v40  ;;  %3341 = vmatprep.subr.mxu0 %v5261_v29  ;;  %v5266_v40 = vld [vmem:[#allocation91_spill] sm:$0xff]  ;;  %v2538_v29 = vand.u32 4294901760, %v2537_v56 }
 0x282   :  { %3384 = vmatprep.subr.mxu1 %v5203_v60  ;;  %3342 = vmatpush3.msra.mxu0 %v5262_v58  ;;  %v5267_v60 = vld [vmem:[#allocation99_spill] sm:$0xff] }
 0x283   :  { %3385 = vmatpush3.msra.mxu1 %v5204_v32  ;;  %3343 = vmatprep.subr.mxu0 %v5263_v41  ;;  %v5268_v32 = vld [vmem:[#allocation102_spill] sm:$0xff] }
 0x284   :  { %3386 = vmatprep.subr.mxu1 %v5205_v49  ;;  %3344 = vmatpush3.msra.mxu0 %v5264_v36  ;;  %v5270_v49 = vld [vmem:[#allocation106_spill] sm:$0xff] }
 0x285   :  { %3387 = vmatpush3.msra.mxu1 %v5206_v2  ;;  %3345 = vmatprep.subr.mxu0 %v5265_v63  ;;  %v5271_v2 = vld [vmem:[#allocation107_spill] sm:$0xff] }
 0x286   :  { %3388 = vmatprep.subr.mxu1 %v5207_v45  ;;  %3346 = vmatpush3.msra.mxu0 %v5266_v40  ;;  %v5273_v45 = vld [vmem:[#allocation117_spill] sm:$0xff] }
 0x287   :  { %3389 = vmatpush3.msra.mxu1 %v5208_v54  ;;  %3347 = vmatprep.subr.mxu0 %v5267_v60  ;;  %v70_v54 = vld [vmem:[%s4804_s4 + $0x38] sm:$0xff] }
 0x288   :  { %2373 = vmatmul.mubr.f32.vlgmr.msra.gmra.mxu1 %v4491_v59  ;;  %3348 = vmatpush3.msra.mxu0 %v5268_v32  ;;  %v4643_v57 = vand.u32 4294901760, %v70_v54 }
 0x289   :  { %3349 = vmatprep.subr.mxu0 %v5269_v13  ;;  %2572 = vmatprep.mubr.f32.mxu1 %v5159_v26 }
 0x28a   :  { %3350 = vmatpush3.msra.mxu0 %v5270_v49  ;;  %v4660_v48 = vsub.f32 %v70_v54, %v4643_v57 }
 0x28b   :  { %3351 = vmatprep.subr.mxu0 %v5271_v2 }
 0x28c   :  { %3352 = vmatpush3.msra.mxu0 %v5272_v55  ;;  %v2494_v47 = vand.u32 4294901760, %v4660_v48 }
 0x28d   :  { %3353 = vmatprep.subr.mxu0 %v5273_v45 }
 0x28e   :  { %3354 = vmatpush3.msra.mxu0 %v5274_v9  ;;  %v2495_v0 = vsub.f32 %v4660_v48, %v2494_v47 }
 0x28f   :  { %2269 = vmatmul.mubr.f32.vlgmr.msra.gmra.mxu0 %v4491_v59  ;;  %v67_v59 = vld [vmem:[%s4804_s4 + $0x20] sm:$0xff]  ;;  %2409 = vmatprep.subr.mxu0 %v4643_v57 }
 0x290   :  { %2456 = vmatprep.mubr.f32.mxu0 %v5159_v26  ;;  %v4664_v61 = vand.u32 4294901760, %v67_v59  ;;  %2411 = vmatpush1.msra.mxu0 %v4648_v14  ;;  %v2496_v19 = vand.u32 4294901760, %v2495_v0 }
 0x291   :  { %2413 = vmatprep.subr.mxu0 %v4662_v62 }
 0x292   :  { %v4693_v23 = vsub.f32 %v67_v59, %v4664_v61  ;;  %2415 = vmatpush1.msra.mxu0 %v4664_v61  ;;  %2497 = vmatprep.subr.mxu1 %v2496_v19 }
 0x293   :  { %2417 = vmatprep.subr.mxu0 %v4666_v43  ;;  %2503 = vmatpush1.msra.mxu1 %v2502_v33 }
 0x294   :  { %v2512_v4 = vand.u32 4294901760, %v4693_v23  ;;  %2419 = vmatpush1.msra.mxu0 %v4681_v28  ;;  %2509 = vmatprep.subr.mxu1 %v2508_v7 }
 0x295   :  { %2421 = vmatprep.subr.mxu0 %v4683_v44 }
 0x296   :  { %v2513_v25 = vsub.f32 %v4693_v23, %v2512_v4  ;;  %2423 = vmatpush1.msra.mxu0 %v4685_v30 }
 0x297   :  { %2606 = vmatprep.subr.mxu0 %v4660_v48 }
 0x298   :  { %v2514_v42 = vand.u32 4294901760, %v2513_v25 }
 0x29a   :  { %2515 = vmatpush1.msra.mxu1 %v2514_v42 }
 0x29b   :  { %2521 = vmatprep.subr.mxu1 %v2520_v1 }
 0x29c   :  { %2527 = vmatpush1.msra.mxu1 %v2526_v46 }
 0x29d   :  { %2533 = vmatprep.subr.mxu1 %v2532_v52 }
 0x29e   :  { %2539 = vmatpush1.msra.mxu1 %v2538_v29 }
 0x29f   :  { %2694 = vmatprep.subr.mxu1 %v4643_v57 }
 0x305   :  { %v3250_v41 = vpop.f32.mrf.mxu1 }
 0x307   :  { %v3251_v40 = vpop.f32.mrf.mxu1 }
 0x308   :  { %v3252_v49 = vadd.f32 %v3251_v40, %v3250_v41 }
 0x30d   :  { %v3215_v58 = vpop.f32.mrf.mxu0 }
 0x30f   :  { %v3216_v36 = vpop.f32.mrf.mxu0 }
 0x310   :  { %v3217_v13 = vadd.f32 %v3216_v36, %v3215_v58 }
 0x312   :  { %v1857_v45 = vadd.f32 %v3252_v49, %v3217_v13 }
 0x326   :  { %v3320_v60 = vpop.f32.mrf.mxu1 }
 0x328   :  { %v3321_v55 = vpop.f32.mrf.mxu1 }
 0x329   :  { %v3322_v24 = vadd.f32 %v3321_v55, %v3320_v60 }
 0x32e   :  { %v3285_v63 = vpop.f32.mrf.mxu0 }
 0x330   :  { %v3286_v32 = vpop.f32.mrf.mxu0 }
 0x331   :  { %v3287_v2 = vadd.f32 %v3286_v32, %v3285_v63 }
 0x333   :  { %v1995_v54 = vadd.f32 %v3287_v2, %v1857_v45 }
 0x335   :  { %v2103_v21 = vadd.f32 %v3322_v24, %v1995_v54 }
 0x348   :  { %v3390_v9 = vpop.f32.mrf.mxu1 }
 0x34a   :  { %v3391_v59 = vpop.f32.mrf.mxu1 }
 0x34b   :  { %v3392_v37 = vadd.f32 %v3391_v59, %v3390_v9 }
 0x34f   :  { %v3355_v31 = vpop.f32.mrf.mxu0 }
 0x351   :  { %v3356_v51 = vpop.f32.mrf.mxu0 }
 0x352   :  { %v3357_v15 = vadd.f32 %v3356_v51, %v3355_v31 }
 0x354   :  { %v2271_v0 = vadd.f32 %v3357_v15, %v2103_v21 }
 0x356   :  { %v2375_v10 = vadd.f32 %v3392_v37, %v2271_v0 }
 0x358   :  { %v2378_v19 = vmul.f32 0.14285715, %v2375_v10 }
 0x35a   :  { %v2379_v20 = vadd.f32 1e-05, %v2378_v19 }
 0x35c   :  { %3396 = vrsqrt.f32 %v2379_v20 }
 0x369   :  { %v3397_v25 = vpop.eup %3396 }
 0x36a   :  { %v2382_v27 = vsel %vm945_vm0, %v3397_v25, 0 }
 0x36b   :  { %v2457_v33 = vand.u32 4294901760, %v2382_v27 }
 0x36d   :  { %v2458_v35 = vsub.f32 %v2382_v27, %v2457_v33  ;;  %2574 = vmatmul.mubr.f32.vlgmr.msra.gmra.mxu1 %v2457_v33 }
 0x36e   :  { %2696 = vmatpush1.msra.mxu1 %v4648_v14  ;;  %2741 = vmatprep.mubr.f32.mxu1 %v5159_v26 }
 0x36f   :  { %2698 = vmatprep.subr.mxu1 %v4662_v62  ;;  %v2459_v39 = vand.u32 4294901760, %v2458_v35 }
 0x370   :  { %2700 = vmatpush1.msra.mxu1 %v4664_v61 }
 0x371   :  { %2702 = vmatprep.subr.mxu1 %v4666_v43  ;;  %v2460_v56 = vsub.f32 %v2458_v35, %v2459_v39 }
 0x372   :  { %2704 = vmatpush1.msra.mxu1 %v4681_v28 }
 0x373   :  { %2706 = vmatprep.subr.mxu1 %v4683_v44  ;;  %v2461_v7 = vand.u32 4294901760, %v2460_v56 }
 0x374   :  { %2708 = vmatpush1.msra.mxu1 %v4685_v30 }
 0x375   :  { %2745 = vmatmul.mubr.f32.vlgmr.msra.gmra.mxu1 %v2459_v39  ;;  %2872 = vmatprep.subr.mxu1 %v4643_v57 }
 0x376   :  { %2462 = vmatmul.mubr.f32.vlgmr.msra.gmra.mxu0 %v2461_v7  ;;  %2874 = vmatpush1.msra.mxu1 %v4648_v14 }
 0x377   :  { %2609 = vmatpush1.msra.mxu0 %v4679_v6  ;;  %2876 = vmatprep.subr.mxu1 %v4662_v62 }
 0x378   :  { %2612 = vmatprep.subr.mxu0 %v4690_v22  ;;  %2878 = vmatpush1.msra.mxu1 %v4664_v61 }
 0x379   :  { %2615 = vmatpush1.msra.mxu0 %v4693_v23  ;;  %2880 = vmatprep.subr.mxu1 %v4666_v43 }
 0x37a   :  { %2618 = vmatprep.subr.mxu0 %v4696_v50  ;;  %2882 = vmatpush1.msra.mxu1 %v4681_v28 }
 0x37b   :  { %2621 = vmatpush1.msra.mxu0 %v4701_v53  ;;  %2884 = vmatprep.subr.mxu1 %v4683_v44 }
 0x37c   :  { %2624 = vmatprep.subr.mxu0 %v4704_v16  ;;  %2660 = vmatprep.mubr.f32.mxu0 %v5159_v26 }
 0x37d   :  { %2627 = vmatpush1.msra.mxu0 %v4707_v8  ;;  %2886 = vmatpush1.msra.mxu1 %v4685_v30 }
 0x37e   :  { %2919 = vmatprep.mubr.f32.mxu1 %v5159_v26  ;;  %2663 = vmatmul.mubr.f32.vlgmr.msra.gmra.mxu0 %v2458_v35 }
 0x37f   :  { %2778 = vmatprep.subr.mxu0 %v2494_v47  ;;  %2921 = vmatmul.mubr.f32.vlgmr.msra.gmra.mxu1 %v2457_v33  ;;  %v5275_v47 = vld [vmem:[#allocation92_spill] sm:$0xff] }
 0x380   :  { %2782 = vmatpush1.msra.mxu0 %v2500_v34  ;;  %2839 = vmatprep.mubr.f32.mxu0 %v5159_v26  ;;  %v2942_v22 = vsub.s32 0, %v5275_v47  ;;  %v2946_v23 = vsub.s32 1, %v5275_v47  ;;  %v22_v34 = vld [vmem:[%s4801_s1] sm:$0x3]  ;;  %s2965_s1 = sshll.u32 %s3422_s12, 4  ;;  %s2966_s1 = int_to_ptr.vmem [resolvable:$true] %s2965_s1 }
 0x381   :  { %2786 = vmatprep.subr.mxu0 %v2506_v3  ;;  %s3398_s13 = scalar_lea.vmem %s2966_s1, 64  ;;  %p3403_p1 = scmp.lt.s32.totalorder %s2966_s1, %s2966_s1 }
 0x382   :  { %2790 = vmatpush1.msra.mxu0 %v2512_v4  ;;  %p3399_p0 = scmp.ne.s32.totalorder %s2966_s1, %s3398_s13  ;;  %p3404_p2 = scmp.lt.s32.totalorder %s3398_s13, %s3398_s13 }
 0x383   :  { %2794 = vmatprep.subr.mxu0 %v2518_v5  ;;  %v2943_v5 = vrot.slane %v22_v34, %v2942_v22 }
 0x384   :  { %2798 = vmatpush1.msra.mxu0 %v2524_v11  ;;  %v2947_v11 = vrot.slane %v22_v34, %v2946_v23  ;;  %p3405_p3 = por %p3404_p2, %p3403_p1 }
 0x385   :  { %2802 = vmatprep.subr.mxu0 %v2530_v12 }
 0x386   :  { %2806 = vmatpush1.msra.mxu0 %v2536_v18  ;;  %v2948_v52 = vcombine.low %v2943_v5, %v2947_v11  ;;  %p3406_p4 = pnand %p3405_p3, %p3399_p0 }
 0x387   :  { %2841 = vmatmul.mubr.f32.vlgmr.msra.gmra.mxu0 %v2457_v33 }
 0x388   :  { %v2955_v41 = vrot.slane %v2948_v52, %v5210_v38 }
 0x42d   :  { %v2575_v57 = vpop.f32.mrf.mxu1 }
 0x42f   :  { %v2577_v62 = vpop.f32.mrf.mxu1 }
 0x435   :  { %v2746_v43 = vpop.f32.mrf.mxu1 }
 0x436   :  { %v2463_v26 = vpop.f32.mrf.mxu0 }
 0x437   :  { %v2576_v61 = vadd.f32 %v2575_v57, %v2463_v26  ;;  %v2748_v50 = vpop.f32.mrf.mxu1 }
 0x438   :  { %v2465_v14 = vpop.f32.mrf.mxu0 }
 0x439   :  { %v2578_v28 = vadd.f32 %v2577_v62, %v2465_v14 }
 0x43e   :  { %v2664_v48 = vpop.f32.mrf.mxu0 }
 0x43f   :  { %v2665_v44 = vadd.f32 %v2664_v48, %v2576_v61  ;;  %v2922_v16 = vpop.f32.mrf.mxu1 }
 0x440   :  { %v2666_v6 = vpop.f32.mrf.mxu0 }
 0x441   :  { %v2667_v30 = vadd.f32 %v2666_v6, %v2578_v28  ;;  %v2747_v53 = vadd.f32 %v2746_v43, %v2665_v44  ;;  %v2924_v42 = vpop.f32.mrf.mxu1 }
 0x443   :  { %v2749_v4 = vadd.f32 %v2748_v50, %v2667_v30 }
 0x447   :  { %v2842_v8 = vpop.f32.mrf.mxu0 }
 0x448   :  { %v2843_v3 = vadd.f32 %v2842_v8, %v2747_v53 }
 0x449   :  { %v2844_v12 = vpop.f32.mrf.mxu0 }
 0x44a   :  { %v2845_v18 = vadd.f32 %v2844_v12, %v2749_v4  ;;  %v2923_v1 = vadd.f32 %v2922_v16, %v2843_v3 }
 0x44c   :  { %v2925_v46 = vadd.f32 %v2924_v42, %v2845_v18 }
 0x44e   :  { %v2929_v29 = vcombine.low %v2923_v1, %v2925_v46 }
 0x450   :  { %v2936_v58 = vrot.slane %v2929_v29, %v5210_v38 }
 0x452   :  { %v2938_v36 = vmul.f32 %v2936_v58, %v4486_v17 }
 0x454   :  { %v2957_v63 = vadd.f32 %v2955_v41, %v2938_v36 }
 0x456   :  { %2958 = vst [vmem:[#allocation2] sm:$0xf] %v2957_v63 }
 0x457   :  { %3409 = shalt.err (!%p3406_p4)
}
 0x458   :  { %2968 = dma.vmem_to_hbm [thread:$0]  %s2966_s1, 64, %s4805_s5, [#allocation3]  }
 0x459   :  { %3418 = dma.done.wait [#allocation3], 64  }
 0x45a   :  { %3419 = vsyncadd [#allocation3], 4294967232 }
 0x45b   :  { %2972 = vsyncpa [#allocation3], 1 }

</bundles_post_ra>
